<compile_context>
chip_gen: v5e
topology: v5e:2x2
jax: 0.10.0
libtpu: 0.0.40
codegen_flags: <defaults>
</compile_context>

<pallas_src>
import functools
import math

import jax
import jax.numpy as jnp
from jax.experimental import pallas as pl
from jax.experimental.pallas import tpu as pltpu


# --------------------------- Pallas kernel: fused circular Conv1d(k=3) ---------------------------
def _token_conv_kernel(x_ref, w_ref, o_ref, *, precision):
    # x_ref: (TR, 3C) im2col rows; w_ref: (3C, D) fused conv taps; o_ref: (TR, D) output tile.
    o_ref[...] = jnp.dot(
        x_ref[...],
        w_ref[...],
        preferred_element_type=jnp.float32,
        precision=precision,
    ).astype(o_ref.dtype)


# --------------------------- tiling helpers ---------------------------
def _round_up(n, m):
    return ((n + m - 1) // m) * m


def _choose_row_tiling(total_rows, k_dim, d_model, in_bytes, out_bytes):
    """Largest VMEM-safe row tile; even #grid steps when >1 (v7x two-TC load balance)."""
    try:
        vmem_cap = pltpu.get_tpu_info().vmem_capacity_bytes
    except Exception:
        vmem_cap = 64 << 20  # conservative (v7x physical VMEM)
    # Stay well inside every generation's scoped-VMEM default (16 / 32 / 32 MiB).
    budget = min(vmem_cap // 4, 12 << 20)
    per_row = 2 * (k_dim * in_bytes + d_model * out_bytes)        # double-buffered in + out
    cap = (budget - 2 * k_dim * d_model * in_bytes) // per_row
    cap = max(16, min((cap // 16) * 16, 8192))                    # sublane-friendly, bounded
    if total_rows <= cap:
        return _round_up(total_rows, 16), 1
    steps = pl.cdiv(total_rows, cap)
    if steps % 2:
        steps += 1            # even grid: both v7x TensorCores get equal work
    tile = _round_up(pl.cdiv(total_rows, steps), 16)
    steps = pl.cdiv(total_rows, tile)
    return tile, steps


# --------------------------- wrapper ---------------------------
def token_embedding(x, weight, *, out_dtype=None):
    """x: (B, L, c_in) float; weight: (d_model, c_in, 3) in PyTorch Conv1d layout."""
    B, L, C = x.shape
    D = weight.shape[0]

    # Keep bf16 inputs in bf16 (MXU takes bf16 on v5e/v6e/v7x); otherwise compute in f32.
    compute_dtype = jnp.bfloat16 if x.dtype == jnp.bfloat16 else jnp.float32
    out_dtype = out_dtype if out_dtype is not None else x.dtype
    precision = jax.lax.Precision.HIGHEST if compute_dtype == jnp.float32 else None

    # im2col with circular wrap (== circular padding of 1): column block k holds x[t-1+k].
    x3 = jnp.concatenate(
        [jnp.roll(x, 1, axis=1), x, jnp.roll(x, -1, axis=1)], axis=-1
    )                                                              # (B, L, 3C)
    x3 = x3.reshape(B * L, 3 * C).astype(compute_dtype)
    # PyTorch weight (D, C, 3) -> (3, C, D) -> (3C, D); row k*C+c multiplies x[t-1+k, c].
    w = jnp.transpose(weight, (2, 1, 0)).reshape(3 * C, D).astype(compute_dtype)

    total_rows = B * L
    in_bytes = jnp.dtype(compute_dtype).itemsize
    out_bytes = jnp.dtype(out_dtype).itemsize
    tile_rows, steps = _choose_row_tiling(total_rows, 3 * C, D, in_bytes, out_bytes)
    padded_rows = tile_rows * steps
    if padded_rows != total_rows:
        x3 = jnp.pad(x3, ((0, padded_rows - total_rows), (0, 0)))

    out = pl.pallas_call(
        functools.partial(_token_conv_kernel, precision=precision),
        out_shape=jax.ShapeDtypeStruct((padded_rows, D), out_dtype),
        grid_spec=pltpu.PrefetchScalarGridSpec(
            num_scalar_prefetch=0,
            grid=(steps,),
            in_specs=[
                pl.BlockSpec((tile_rows, 3 * C), lambda i: (i, 0)),
                pl.BlockSpec((3 * C, D), lambda i: (0, 0)),
            ],
            out_specs=pl.BlockSpec((tile_rows, D), lambda i: (i, 0)),
        ),
        compiler_params=pltpu.CompilerParams(dimension_semantics=("parallel",)),
    )(x3, w)

    return out[:total_rows].reshape(B, L, D)


# --------------------------- pure-JAX reference (for checking) ---------------------------
def ref_token_embedding(x, weight):
    # mirrors: Conv1d(c_in, d_model, k=3, padding=1, padding_mode='circular', bias=False)
    xc = jnp.transpose(x, (0, 2, 1)).astype(jnp.float32)             # (B, C, L)
    xp = jnp.concatenate([xc[:, :, -1:], xc, xc[:, :, :1]], axis=2)  # circular pad
    y = jax.lax.conv_general_dilated(
        xp, weight.astype(jnp.float32), window_strides=(1,), padding="VALID",
        dimension_numbers=("NCH", "OIH", "NCH"),
        precision=jax.lax.Precision.HIGHEST)                         # (B, D, L)
    return jnp.transpose(y, (0, 2, 1))                               # (B, L, D)


if __name__ == "__main__":
    # Small, TPU-friendly shapes: d_model = 128 keeps the output store lane-dense;
    # B*L = 300 (not a multiple of the sublane tile) exercises the row-padding path.
    B, L, c_in, d_model = 3, 100, 7, 128

    key = jax.random.PRNGKey(0)
    kx, kw = jax.random.split(key)
    x = jax.random.normal(kx, (B, L, c_in), dtype=jnp.float32)

    # Conv1d weight in PyTorch layout (out_channels, in_channels, kernel_size),
    # kaiming_normal_(mode='fan_in', nonlinearity='leaky_relu') scaling, bias=False.
    fan_in = c_in * 3
    gain = math.sqrt(2.0 / (1.0 + 0.01 ** 2))
    weight = (gain / math.sqrt(fan_in)) * jax.random.normal(
        kw, (d_model, c_in, 3), dtype=jnp.float32)

    out = token_embedding(x, weight)
    out = jax.block_until_ready(out)

    assert out.shape == (B, L, d_model)
    assert bool(jnp.all(jnp.isfinite(out)))

    ref = ref_token_embedding(x, weight)
    max_err = float(jnp.max(jnp.abs(out - ref)))
    assert jnp.allclose(out, ref, atol=1e-5, rtol=1e-5), max_err

    print("KERNEL_OK")
</pallas_src>

<mosaic_0001>
module attributes {stable_mosaic.version = 11 : i64} {
  func.func @_token_conv_kernel(%arg0: i32, %arg1: memref<304x21xf32, #tpu.memory_space<vmem>>, %arg2: memref<21x128xf32, #tpu.memory_space<vmem>>, %arg3: memref<304x128xf32, #tpu.memory_space<vmem>>) attributes {dimension_semantics = [#tpu.dimension_semantics<parallel>], iteration_bounds = array<i64: 1>, scalar_prefetch = 0 : i64, scratch_operands = 0 : i64, tpu.core_type = #tpu.core_type<tc>, window_params = [{transform_indices = @transform_0, window_bounds = array<i64: 304, 21>}, {pipeline_mode = #tpu.pipeline_mode<synchronous>, transform_indices = @transform_1, window_bounds = array<i64: 21, 128>}, {transform_indices = @transform_2, window_bounds = array<i64: 304, 128>}]} {
    %c0 = arith.constant 0 : index
    %c0_0 = arith.constant 0 : index
    %0 = vector.load %arg1[%c0, %c0_0] : memref<304x21xf32, #tpu.memory_space<vmem>>, vector<304x21xf32>
    %c0_1 = arith.constant 0 : index
    %c0_2 = arith.constant 0 : index
    %1 = vector.load %arg2[%c0_1, %c0_2] : memref<21x128xf32, #tpu.memory_space<vmem>>, vector<21x128xf32>
    %cst = arith.constant dense<0.000000e+00> : vector<304x128xf32>
    %2 = tpu.matmul %0, %1, %cst {dimension_numbers = #tpu.dot_dimension_numbers<[1], [0], [0], [1], [0, 0, 1, 1], [], []>, precision = #tpu.contract_precision<fp32>} : vector<304x21xf32>, vector<21x128xf32>, vector<304x128xf32> -> vector<304x128xf32>
    %c0_3 = arith.constant 0 : index
    %c0_4 = arith.constant 0 : index
    %3 = vector.load %arg3[%c0_3, %c0_4] : memref<304x128xf32, #tpu.memory_space<vmem>>, vector<304x128xf32>
    tpu.vector_store %arg3[%c0_3, %c0_4], %2 {strides = array<i32>} : memref<304x128xf32, #tpu.memory_space<vmem>>, vector<304x128xf32>,
    return
  }
  func.func @transform_0(%arg0: i32) -> (i32, i32) {
    %c0_i32 = arith.constant 0 : i32
    %c0_i32_0 = arith.constant 0 : i32
    return %arg0, %c0_i32 : i32, i32
  }
  func.func @transform_1(%arg0: i32) -> (i32, i32) {
    %c0_i32 = arith.constant 0 : i32
    %c0_i32_0 = arith.constant 0 : i32
    %c0_i32_1 = arith.constant 0 : i32
    return %c0_i32, %c0_i32_0 : i32, i32
  }
  func.func @transform_2(%arg0: i32) -> (i32, i32) {
    %c0_i32 = arith.constant 0 : i32
    %c0_i32_0 = arith.constant 0 : i32
    return %arg0, %c0_i32 : i32, i32
  }
}

</mosaic_0001>

<bundles_post_ra>
// kernel: tpu_custom_call.1
= control target key start
LH: loop header
LB: loop body
LE: loop exit
PB: predicated region body
PF: predicated region fallthrough
CT: control target
= control target key end

     0   :  { %vm168_vm0 = vcmask 1044480   ;;  %vm53_vm1 = vcmask 171008   ;;  %s2526_s0 = inlined_call_operand.vmem [shape: f32[304,21], index: 0, kind: input, shape index: {}]   ;;  %s2527_s1 = inlined_call_operand.vmem [shape: f32[21,128], index: 1, kind: input, shape index: {}]   ;;  %s2528_s2 = inlined_call_operand.hbm [shape: f32[304,128], index: 2, kind: output, shape index: {}]  }
   0x1   :  { %v52_v0 = vld [vmem:[%s2527_s1 + $0x10] sm:$0x1f]  ;;  %v51_v1 = vld [vmem:[%s2527_s1 + $0x8] sm:$0xff]  ;;  %v50_v2 = vld [vmem:[%s2527_s1] sm:$0xff] }
   0x2   :  { %v170_v3 = vsel %vm168_vm0, %v52_v0, 0  ;;  %v1609_v4 = vand.u32 4294901760, %v51_v1  ;;  %v1611_v5 = vand.u32 4294901760, %v50_v2  ;;  %v31_v6 = vld [vmem:[%s2526_s0 + $0x98] sm:$0xff]  ;;  %v32_v7 = vld [vmem:[%s2526_s0 + $0xa0] sm:$0xff]  ;;  %v13_v13 = vld [vmem:[%s2526_s0 + $0x8] sm:$0xff] }
   0x3   :  { %v12_v8 = vld [vmem:[%s2526_s0] sm:$0xff]  ;;  %v1622_v9 = vand.u32 4294901760, %v170_v3  ;;  %v112_v10 = vsel %vm53_vm1, %v31_v6, 0  ;;  %v115_v11 = vsel %vm53_vm1, %v32_v7, 0  ;;  %v33_v18 = vld [vmem:[%s2526_s0 + $0xa8] sm:$0xff]  ;;  %v58_v21 = vsel %vm53_vm1, %v13_v13, 0 }
   0x4   :  { %v55_v12 = vsel %vm53_vm1, %v12_v8, 0  ;;  %v1630_v14 = vand.u32 4294901760, %v112_v10  ;;  %v516_v15 = vsub.f32 %v51_v1, %v1609_v4  ;;  %v522_v16 = vsub.f32 %v50_v2, %v1611_v5 }
   0x5   :  { %v1634_v17 = vand.u32 4294901760, %v115_v11  ;;  %1547 = vmatpush.msra.mxu2 %v1622_v9  ;;  %v510_v19 = vsub.f32 %v170_v3, %v1622_v9  ;;  %186 = vmatpush.msra.mxu0 %v1622_v9  ;;  %v1642_v20 = vand.u32 4294901760, %v55_v12 }
   0x6   :  { %7 = vsyncpa [#allocation3], 0  ;;  %v1646_v22 = vsub.f32 %v112_v10, %v1630_v14  ;;  %v517_v23 = vand.u32 4294901760, %v516_v15  ;;  %v523_v24 = vand.u32 4294901760, %v522_v16  ;;  %v118_v28 = vsel %vm53_vm1, %v33_v18, 0  ;;  %v14_v36 = vld [vmem:[%s2526_s0 + $0x10] sm:$0xff] }
   0x7   :  { %v1649_v25 = vsub.f32 %v115_v11, %v1634_v17  ;;  %1548 = vmatpush.msra.mxu2 %v1609_v4  ;;  %v511_v26 = vand.u32 4294901760, %v510_v19  ;;  %188 = vmatpush.msra.mxu0 %v1609_v4  ;;  %v1654_v27 = vsub.f32 %v55_v12, %v1642_v20  ;;  %v1657_v29 = vand.u32 4294901760, %v58_v21  ;;  %v34_v45 = vld [vmem:[%s2526_s0 + $0xb0] sm:$0xff]  ;;  %v15_v52 = vld [vmem:[%s2526_s0 + $0x18] sm:$0xff]  ;;  %v16_v2 = vld [vmem:[%s2526_s0 + $0x20] sm:$0xff]  ;;  %s1535_s7 = sshll.u32 %s2528_s2, 4  ;;  %s1536_s7 = int_to_ptr.hbm [resolvable:$true] %s1535_s7 }
   0x8   :  { %v2537_v30 = vand.u32 4294901760, %v1646_v22  ;;  %v518_v31 = vsub.f32 %v516_v15, %v517_v23  ;;  %v524_v33 = vsub.f32 %v522_v16, %v523_v24  ;;  %v1673_v39 = vand.u32 4294901760, %v118_v28  ;;  %v35_v62 = vld [vmem:[%s2526_s0 + $0xb8] sm:$0xff]  ;;  %v36_v12 = vld [vmem:[%s2526_s0 + $0xc0] sm:$0xff]  ;;  %v17_v18 = vld [vmem:[%s2526_s0 + $0x28] sm:$0xff]  ;;  %s1583_s8 = smov 128  }
   0x9   :  { %1549 = vmatpush.msra.mxu2 %v1611_v5  ;;  %v512_v32 = vsub.f32 %v510_v19, %v511_v26  ;;  %190 = vmatpush.msra.mxu0 %v1611_v5  ;;  %v2551_v34 = vand.u32 4294901760, %v1654_v27  ;;  %v1664_v35 = vsub.f32 %v58_v21, %v1657_v29  ;;  %v2536_v38 = vand.u32 4294901760, %v1649_v25  ;;  %s1584_s9 = smov 8  }
   0xa   :  { %v346_v37 = vsub.f32 %v1646_v22, %v2537_v30  ;;  %v519_v41 = vand.u32 4294901760, %v518_v31  ;;  %v61_v46 = vsel %vm53_vm1, %v14_v36, 0  ;;  %v525_v47 = vand.u32 4294901760, %v524_v33  ;;  %v37_v36 = vld [vmem:[%s2526_s0 + $0xc8] sm:$0xff] }
   0xb   :  { %695 = vmatpush.msrb.mxu2 %v510_v19  ;;  %1157 = vmatpush.msrb.mxu0 %v511_v26  ;;  %v513_v40 = vand.u32 4294901760, %v512_v32  ;;  %v194_v42 = vsub.f32 %v1654_v27, %v2551_v34  ;;  %v2549_v44 = vand.u32 4294901760, %v1664_v35  ;;  %v354_v49 = vsub.f32 %v1649_v25, %v2536_v38 }
   0xc   :  { %v347_v43 = vand.u32 4294901760, %v346_v37  ;;  %v1687_v50 = vsub.f32 %v118_v28, %v1673_v39  ;;  %v1689_v51 = vand.u32 4294901760, %v61_v46  ;;  %v121_v53 = vsel %vm53_vm1, %v34_v45, 0 }
   0xd   :  { %698 = vmatpush.msrb.mxu2 %v516_v15  ;;  %1161 = vmatpush.msrb.mxu0 %v517_v23  ;;  %v195_v48 = vand.u32 4294901760, %v194_v42  ;;  %v202_v54 = vsub.f32 %v1664_v35, %v2549_v44  ;;  %v64_v56 = vsel %vm53_vm1, %v15_v52, 0  ;;  %v355_v57 = vand.u32 4294901760, %v354_v49  ;;  %v18_v42 = vld [vmem:[%s2526_s0 + $0x30] sm:$0xff] }
   0xe   :  { %1550 = vmatpush.msra.mxu3 %v513_v40  ;;  %514 = vmatpush.msra.mxu1 %v513_v40  ;;  %v1699_v55 = vsub.f32 %v61_v46, %v1689_v51  ;;  %v2535_v58 = vand.u32 4294901760, %v1687_v50  ;;  %v1705_v59 = vand.u32 4294901760, %v121_v53  ;;  %v1713_v63 = vand.u32 4294901760, %v64_v56 }
   0xf   :  { %348 = vmatmul.f32.vlgmr.msra.gmra.mxu2 %v347_v43  ;;  %1165 = vmatpush.msrb.mxu0 %v523_v24  ;;  %v203_v60 = vand.u32 4294901760, %v202_v54  ;;  %v124_v3 = vsel %vm53_vm1, %v35_v62, 0  ;;  %v67_v7 = vsel %vm53_vm1, %v16_v2, 0  ;;  %v127_v19 = vsel %vm53_vm1, %v36_v12, 0 }
  0x10   :  { %1551 = vmatpush.msra.mxu3 %v519_v41  ;;  %520 = vmatpush.msra.mxu1 %v519_v41  ;;  %v2548_v61 = vand.u32 4294901760, %v1699_v55  ;;  %v362_v0 = vsub.f32 %v1687_v50, %v2535_v58  ;;  %v1721_v1 = vsub.f32 %v121_v53, %v1705_v59  ;;  %v1733_v6 = vsub.f32 %v64_v56, %v1713_v63  ;;  %v38_v56 = vld [vmem:[%s2526_s0 + $0xd0] sm:$0xff] }
  0x11   :  { %196 = vmatmul.f32.vlgmr.msra.gmra.mxu0 %v195_v48  ;;  %701 = vmatpush.msrb.mxu2 %v522_v16  ;;  %v1739_v10 = vand.u32 4294901760, %v124_v3  ;;  %v1745_v13 = vand.u32 4294901760, %v67_v7  ;;  %v70_v24 = vsel %vm53_vm1, %v17_v18, 0  ;;  %v1767_v31 = vand.u32 4294901760, %v127_v19 }
  0x12   :  { %1552 = vmatpush.msra.mxu3 %v525_v47  ;;  %526 = vmatpush.msra.mxu1 %v525_v47  ;;  %v363_v8 = vand.u32 4294901760, %v362_v0  ;;  %v2547_v11 = vand.u32 4294901760, %v1733_v6  ;;  %v1773_v37 = vand.u32 4294901760, %v70_v24  ;;  %v130_v43 = vsel %vm53_vm1, %v37_v36, 0  ;;  %v19_v0 = vld [vmem:[%s2526_s0 + $0x38] sm:$0xff] }
  0x13   :  { %604 = vmatmul.f32.vlgmr.msra.gmra.mxu3 %v1630_v14  ;;  %528 = vmatmul.f32.vlgmr.msra.gmra.mxu1 %v1642_v20  ;;  %2622 = vst [vmem:[#allocation5_spill] sm:$0xff] %v1739_v10  ;;  %v1751_v16 = vsub.f32 %v124_v3, %v1739_v10  ;;  %v1761_v23 = vsub.f32 %v67_v7, %v1745_v13  ;;  %v73_v47 = vsel %vm53_vm1, %v18_v42, 0  ;;  %v1795_v52 = vand.u32 4294901760, %v130_v43 }
  0x14   :  { %907 = vmatpush.msrb.mxu3 %v1622_v9  ;;  %1333 = vmatpush.msrb.mxu1 %v1622_v9  ;;  %v2534_v9 = vand.u32 4294901760, %v1721_v1  ;;  %v218_v21 = vsub.f32 %v1733_v6, %v2547_v11  ;;  %2624 = vst [vmem:[#allocation7_spill] sm:$0xff] %v1767_v31  ;;  %v1779_v41 = vsub.f32 %v127_v19, %v1767_v31  ;;  %v133_v2 = vsel %vm53_vm1, %v38_v56, 0  ;;  %v39_v19 = vld [vmem:[%s2526_s0 + $0xd8] sm:$0xff] }
  0x15   :  { %2623 = vst [vmem:[#allocation6_spill] sm:$0xff] %v1751_v16  ;;  %v2533_v28 = vand.u32 4294901760, %v1751_v16  ;;  %v2545_v33 = vand.u32 4294901760, %v1761_v23  ;;  %v1789_v46 = vsub.f32 %v70_v24, %v1773_v37  ;;  %v1807_v62 = vsub.f32 %v130_v43, %v1795_v52 }
  0x16   :  { %909 = vmatpush.msrb.mxu3 %v1609_v4  ;;  %1335 = vmatpush.msrb.mxu1 %v1609_v4  ;;  %v210_v4 = vsub.f32 %v1699_v55, %v2548_v61  ;;  %v370_v15 = vsub.f32 %v1721_v1, %v2534_v9  ;;  %v219_v32 = vand.u32 4294901760, %v218_v21  ;;  %2625 = vst [vmem:[#allocation8_spill] sm:$0xff] %v1779_v41  ;;  %v2531_v49 = vand.u32 4294901760, %v1779_v41  ;;  %v42_v9 = vld [vmem:[%s2526_s0 + $0xf0] sm:$0xff] }
  0x17   :  { %356 = vmatmul.f32.gmra.mxu2 %v355_v57  ;;  %v378_v40 = vsub.f32 %v1751_v16, %v2533_v28  ;;  %v226_v45 = vsub.f32 %v1761_v23, %v2545_v33  ;;  %2626 = vst [vmem:[#allocation9_spill] sm:$0xff] %v1795_v52  ;;  %v2543_v54 = vand.u32 4294901760, %v1789_v46  ;;  %v1801_v57 = vand.u32 4294901760, %v73_v47 }
  0x18   :  { %911 = vmatpush.msrb.mxu3 %v1611_v5  ;;  %1337 = vmatpush.msrb.mxu1 %v1611_v5  ;;  %v211_v5 = vand.u32 4294901760, %v210_v4  ;;  %v371_v26 = vand.u32 4294901760, %v370_v15  ;;  %2627 = vst [vmem:[#allocation10_spill] sm:$0xff] %v1807_v62  ;;  %v76_v7 = vsel %vm53_vm1, %v19_v0, 0  ;;  %v1823_v12 = vand.u32 4294901760, %v133_v2 }
  0x19   :  { %204 = vmatmul.f32.gmra.mxu0 %v203_v60  ;;  %v379_v48 = vand.u32 4294901760, %v378_v40  ;;  %v227_v53 = vand.u32 4294901760, %v226_v45  ;;  %v386_v60 = vsub.f32 %v1779_v41, %v2531_v49  ;;  %v234_v3 = vsub.f32 %v1789_v46, %v2543_v54 }
  0x1a   :  { %v1817_v4 = vsub.f32 %v73_v47, %v1801_v57  ;;  %2628 = vst [vmem:[#allocation11_spill] sm:$0xff] %v1823_v12  ;;  %v1829_v21 = vand.u32 4294901760, %v76_v7  ;;  %v136_v36 = vsel %vm53_vm1, %v39_v19, 0  ;;  %v145_v58 = vsel %vm53_vm1, %v42_v9, 0 }
  0x1b   :  { %608 = vmatmul.f32.gmra.mxu3 %v1634_v17  ;;  %532 = vmatmul.f32.gmra.mxu1 %v1657_v29  ;;  %v235_v15 = vand.u32 4294901760, %v234_v3 }
  0x1c   :  { %v2542_v18 = vand.u32 4294901760, %v1817_v4  ;;  %v1845_v42 = vsub.f32 %v76_v7, %v1829_v21  ;;  %v21_v7 = vld [vmem:[%s2526_s0 + $0x48] sm:$0xff] }
  0x1e   :  { %v242_v40 = vsub.f32 %v1817_v4, %v2542_v18  ;;  %v2541_v56 = vand.u32 4294901760, %v1845_v42 }
  0x1f   :  { %364 = vmatmul.f32.gmra.mxu2 %v363_v8  ;;  %v387_v8 = vand.u32 4294901760, %v386_v60  ;;  %v40_v60 = vld [vmem:[%s2526_s0 + $0xe0] sm:$0xff] }
  0x21   :  { %212 = vmatmul.f32.gmra.mxu0 %v211_v5  ;;  %v2530_v5 = vand.u32 4294901760, %v1807_v62 }
  0x23   :  { %612 = vmatmul.f32.gmra.mxu3 %v1673_v39  ;;  %536 = vmatmul.f32.gmra.mxu1 %v1689_v51  ;;  %v394_v24 = vsub.f32 %v1807_v62, %v2530_v5 }
  0x25   :  { %v395_v45 = vand.u32 4294901760, %v394_v24  ;;  %v82_v24 = vsel %vm53_vm1, %v21_v7, 0 }
  0x27   :  { %372 = vmatmul.f32.gmra.mxu2 %v371_v26  ;;  %v1835_v26 = vsub.f32 %v133_v2, %v1823_v12 }
  0x29   :  { %220 = vmatmul.f32.gmra.mxu0 %v219_v32  ;;  %2629 = vst [vmem:[#allocation12_spill] sm:$0xff] %v1835_v26  ;;  %v20_v32 = vld [vmem:[%s2526_s0 + $0x40] sm:$0xff]  ;;  %v2529_v47 = vand.u32 4294901760, %v1835_v26 }
  0x2a   :  { %v79_v43 = vsel %vm53_vm1, %v20_v32, 0 }
  0x2b   :  { %616 = vmatmul.f32.gmra.mxu3 %v1705_v59  ;;  %540 = vmatmul.f32.gmra.mxu1 %v1713_v63  ;;  %v1857_v0 = vand.u32 4294901760, %v79_v43  ;;  %v402_v2 = vsub.f32 %v1835_v26, %v2529_v47 }
  0x2d   :  { %v1873_v19 = vsub.f32 %v79_v43, %v1857_v0  ;;  %v403_v32 = vand.u32 4294901760, %v402_v2  ;;  %v1885_v43 = vand.u32 4294901760, %v82_v24 }
  0x2f   :  { %380 = vmatmul.f32.gmra.mxu2 %v379_v48  ;;  %v1851_v48 = vand.u32 4294901760, %v136_v36 }
  0x31   :  { %228 = vmatmul.f32.gmra.mxu0 %v227_v53  ;;  %2630 = vst [vmem:[#allocation13_spill] sm:$0xff] %v1851_v48  ;;  %v243_v53 = vand.u32 4294901760, %v242_v40  ;;  %v1863_v3 = vsub.f32 %v136_v36, %v1851_v48 }
  0x33   :  { %620 = vmatmul.f32.gmra.mxu3 %v1739_v10  ;;  %544 = vmatmul.f32.gmra.mxu1 %v1745_v13  ;;  %2631 = vst [vmem:[#allocation14_spill] sm:$0xff] %v1863_v3  ;;  %v2532_v36 = vand.u32 4294901760, %v1863_v3 }
  0x35   :  { %v410_v2 = vsub.f32 %v1863_v3, %v2532_v36 }
  0x37   :  { %388 = vmatmul.f32.gmra.mxu2 %v387_v8  ;;  %v139_v8 = vsel %vm53_vm1, %v40_v60, 0  ;;  %v41_v60 = vld [vmem:[%s2526_s0 + $0xe8] sm:$0xff] }
  0x38   :  { %v1879_v40 = vand.u32 4294901760, %v139_v8  ;;  %v142_v47 = vsel %vm53_vm1, %v41_v60, 0 }
  0x39   :  { %236 = vmatmul.f32.gmra.mxu0 %v235_v15  ;;  %v250_v15 = vsub.f32 %v1845_v42, %v2541_v56  ;;  %v1907_v28 = vand.u32 4294901760, %v142_v47 }
  0x3a   :  { %2632 = vst [vmem:[#allocation15_spill] sm:$0xff] %v1879_v40  ;;  %v1891_v7 = vsub.f32 %v139_v8, %v1879_v40  ;;  %v411_v8 = vand.u32 4294901760, %v410_v2 }
  0x3b   :  { %624 = vmatmul.f32.gmra.mxu3 %v1767_v31  ;;  %548 = vmatmul.f32.gmra.mxu1 %v1773_v37  ;;  %2634 = vst [vmem:[#allocation17_spill] sm:$0xff] %v1907_v28 }
  0x3c   :  { %2633 = vst [vmem:[#allocation16_spill] sm:$0xff] %v1891_v7  ;;  %v2538_v36 = vand.u32 4294901760, %v1891_v7 }
  0x3e   :  { %v418_v2 = vsub.f32 %v1891_v7, %v2538_v36 }
  0x3f   :  { %396 = vmatmul.f32.gmra.mxu2 %v395_v45  ;;  %v251_v45 = vand.u32 4294901760, %v250_v15  ;;  %v22_v15 = vld [vmem:[%s2526_s0 + $0x50] sm:$0xff] }
  0x40   :  { %v85_v49 = vsel %vm53_vm1, %v22_v15, 0  ;;  %v1919_v15 = vsub.f32 %v142_v47, %v1907_v28  ;;  %v419_v47 = vand.u32 4294901760, %v418_v2 }
  0x41   :  { %244 = vmatmul.f32.gmra.mxu0 %v243_v53  ;;  %v2539_v53 = vand.u32 4294901760, %v1873_v19 }
  0x42   :  { %2635 = vst [vmem:[#allocation18_spill] sm:$0xff] %v1919_v15  ;;  %v2544_v36 = vand.u32 4294901760, %v1919_v15 }
  0x43   :  { %628 = vmatmul.f32.gmra.mxu3 %v1795_v52  ;;  %552 = vmatmul.f32.gmra.mxu1 %v1801_v57  ;;  %v258_v5 = vsub.f32 %v1873_v19, %v2539_v53  ;;  %v1935_v53 = vand.u32 4294901760, %v145_v58 }
  0x44   :  { %v426_v2 = vsub.f32 %v1919_v15, %v2544_v36 }
  0x45   :  { %v259_v60 = vand.u32 4294901760, %v258_v5  ;;  %v23_v5 = vld [vmem:[%s2526_s0 + $0x58] sm:$0xff]  ;;  %2636 = vst [vmem:[#allocation19_spill] sm:$0xff] %v1935_v53 }
  0x46   :  { %v88_v30 = vsel %vm53_vm1, %v23_v5, 0  ;;  %v1947_v5 = vsub.f32 %v145_v58, %v1935_v53  ;;  %v427_v58 = vand.u32 4294901760, %v426_v2 }
  0x47   :  { %404 = vmatmul.f32.gmra.mxu2 %v403_v32  ;;  %v1901_v32 = vsub.f32 %v82_v24, %v1885_v43  ;;  %v1913_v24 = vand.u32 4294901760, %v85_v49 }
  0x48   :  { %2637 = vst [vmem:[#allocation20_spill] sm:$0xff] %v1947_v5  ;;  %v2550_v36 = vand.u32 4294901760, %v1947_v5 }
  0x49   :  { %252 = vmatmul.f32.gmra.mxu0 %v251_v45  ;;  %v2540_v45 = vand.u32 4294901760, %v1901_v32 }
  0x4a   :  { %v434_v2 = vsub.f32 %v1947_v5, %v2550_v36 }
  0x4b   :  { %632 = vmatmul.f32.gmra.mxu3 %v1823_v12  ;;  %556 = vmatmul.f32.gmra.mxu1 %v1829_v21  ;;  %v266_v38 = vsub.f32 %v1901_v32, %v2540_v45  ;;  %v43_v45 = vld [vmem:[%s2526_s0 + $0xf8] sm:$0xff] }
  0x4c   :  { %v148_v56 = vsel %vm53_vm1, %v43_v45, 0 }
  0x4d   :  { %v267_v9 = vand.u32 4294901760, %v266_v38  ;;  %v24_v38 = vld [vmem:[%s2526_s0 + $0x60] sm:$0xff]  ;;  %v1963_v33 = vand.u32 4294901760, %v148_v56 }
  0x4e   :  { %v91_v54 = vsel %vm53_vm1, %v24_v38, 0 }
  0x4f   :  { %412 = vmatmul.f32.gmra.mxu2 %v411_v8  ;;  %v1929_v8 = vsub.f32 %v85_v49, %v1913_v24  ;;  %v1941_v49 = vand.u32 4294901760, %v88_v30  ;;  %2638 = vst [vmem:[#allocation21_spill] sm:$0xff] %v1963_v33  ;;  %v1975_v38 = vsub.f32 %v148_v56, %v1963_v33  ;;  %v435_v56 = vand.u32 4294901760, %v434_v2 }
  0x51   :  { %260 = vmatmul.f32.gmra.mxu0 %v259_v60  ;;  %v2546_v60 = vand.u32 4294901760, %v1929_v8  ;;  %2639 = vst [vmem:[#allocation22_spill] sm:$0xff] %v1975_v38  ;;  %v2559_v36 = vand.u32 4294901760, %v1975_v38 }
  0x53   :  { %636 = vmatmul.f32.gmra.mxu3 %v1851_v48  ;;  %560 = vmatmul.f32.gmra.mxu1 %v1857_v0  ;;  %v274_v18 = vsub.f32 %v1929_v8, %v2546_v60  ;;  %v44_v60 = vld [vmem:[%s2526_s0 + $0x100] sm:$0xff]  ;;  %v442_v2 = vsub.f32 %v1975_v38, %v2559_v36 }
  0x54   :  { %v151_v11 = vsel %vm53_vm1, %v44_v60, 0 }
  0x55   :  { %v275_v45 = vand.u32 4294901760, %v274_v18  ;;  %v25_v18 = vld [vmem:[%s2526_s0 + $0x68] sm:$0xff]  ;;  %v1991_v34 = vand.u32 4294901760, %v151_v11 }
  0x56   :  { %v94_v44 = vsel %vm53_vm1, %v25_v18, 0 }
  0x57   :  { %420 = vmatmul.f32.gmra.mxu2 %v419_v47  ;;  %v1957_v47 = vsub.f32 %v88_v30, %v1941_v49  ;;  %v1969_v30 = vand.u32 4294901760, %v91_v54  ;;  %2640 = vst [vmem:[#allocation23_spill] sm:$0xff] %v1991_v34  ;;  %v2003_v18 = vsub.f32 %v151_v11, %v1991_v34  ;;  %v443_v11 = vand.u32 4294901760, %v442_v2 }
  0x59   :  { %268 = vmatmul.f32.gmra.mxu0 %v267_v9  ;;  %v2552_v9 = vand.u32 4294901760, %v1957_v47  ;;  %2641 = vst [vmem:[#allocation24_spill] sm:$0xff] %v2003_v18  ;;  %v2568_v36 = vand.u32 4294901760, %v2003_v18 }
  0x5b   :  { %640 = vmatmul.f32.gmra.mxu3 %v1879_v40  ;;  %564 = vmatmul.f32.gmra.mxu1 %v1885_v43  ;;  %v282_v61 = vsub.f32 %v1957_v47, %v2552_v9  ;;  %v45_v9 = vld [vmem:[%s2526_s0 + $0x108] sm:$0xff]  ;;  %v450_v2 = vsub.f32 %v2003_v18, %v2568_v36 }
  0x5d   :  { %v283_v60 = vand.u32 4294901760, %v282_v61  ;;  %v26_v61 = vld [vmem:[%s2526_s0 + $0x70] sm:$0xff] }
  0x5e   :  { %v97_v15 = vsel %vm53_vm1, %v26_v61, 0 }
  0x5f   :  { %428 = vmatmul.f32.gmra.mxu2 %v427_v58  ;;  %v1985_v58 = vsub.f32 %v91_v54, %v1969_v30  ;;  %v1997_v54 = vand.u32 4294901760, %v94_v44 }
  0x61   :  { %276 = vmatmul.f32.gmra.mxu0 %v275_v45  ;;  %v154_v45 = vsel %vm53_vm1, %v45_v9, 0  ;;  %v2642_v5 = vand.u32 4294901760, %v1985_v58 }
  0x62   :  { %v2019_v38 = vand.u32 4294901760, %v154_v45 }
  0x63   :  { %644 = vmatmul.f32.gmra.mxu3 %v1907_v28  ;;  %568 = vmatmul.f32.gmra.mxu1 %v1913_v24  ;;  %v290_v28 = vsub.f32 %v1985_v58, %v2642_v5  ;;  %v46_v5 = vld [vmem:[%s2526_s0 + $0x110] sm:$0xff] }
  0x64   :  { %2643 = vst [vmem:[#allocation25_spill] sm:$0xff] %v2019_v38  ;;  %v2031_v61 = vsub.f32 %v154_v45, %v2019_v38  ;;  %v451_v45 = vand.u32 4294901760, %v450_v2 }
  0x65   :  { %v291_v9 = vand.u32 4294901760, %v290_v28  ;;  %v27_v28 = vld [vmem:[%s2526_s0 + $0x78] sm:$0xff] }
  0x66   :  { %2644 = vst [vmem:[#allocation26_spill] sm:$0xff] %v2031_v61  ;;  %v100_v7 = vsel %vm53_vm1, %v27_v28, 0  ;;  %v2577_v36 = vand.u32 4294901760, %v2031_v61 }
  0x67   :  { %436 = vmatmul.f32.gmra.mxu2 %v435_v56  ;;  %v2013_v56 = vsub.f32 %v94_v44, %v1997_v54  ;;  %v2025_v44 = vand.u32 4294901760, %v97_v15 }
  0x68   :  { %v458_v2 = vsub.f32 %v2031_v61, %v2577_v36 }
  0x69   :  { %284 = vmatmul.f32.gmra.mxu0 %v283_v60  ;;  %v157_v60 = vsel %vm53_vm1, %v46_v5, 0 }
  0x6a   :  { %v2047_v18 = vand.u32 4294901760, %v157_v60 }
  0x6b   :  { %648 = vmatmul.f32.gmra.mxu3 %v1935_v53  ;;  %572 = vmatmul.f32.gmra.mxu1 %v1941_v49  ;;  %v2645_v53 = vand.u32 4294901760, %v2013_v56 }
  0x6c   :  { %2646 = vst [vmem:[#allocation27_spill] sm:$0xff] %v2047_v18  ;;  %v2059_v28 = vsub.f32 %v157_v60, %v2047_v18  ;;  %v459_v60 = vand.u32 4294901760, %v458_v2 }
  0x6d   :  { %v298_v40 = vsub.f32 %v2013_v56, %v2645_v53  ;;  %v47_v53 = vld [vmem:[%s2526_s0 + $0x118] sm:$0xff] }
  0x6e   :  { %2647 = vst [vmem:[#allocation28_spill] sm:$0xff] %v2059_v28  ;;  %v2586_v36 = vand.u32 4294901760, %v2059_v28 }
  0x6f   :  { %444 = vmatmul.f32.gmra.mxu2 %v443_v11  ;;  %v2041_v11 = vsub.f32 %v97_v15, %v2025_v44  ;;  %v299_v5 = vand.u32 4294901760, %v298_v40  ;;  %v2053_v15 = vand.u32 4294901760, %v100_v7  ;;  %v28_v40 = vld [vmem:[%s2526_s0 + $0x80] sm:$0xff] }
  0x70   :  { %v103_v3 = vsel %vm53_vm1, %v28_v40, 0  ;;  %v466_v2 = vsub.f32 %v2059_v28, %v2586_v36 }
  0x71   :  { %292 = vmatmul.f32.gmra.mxu0 %v291_v9  ;;  %v160_v9 = vsel %vm53_vm1, %v47_v53, 0 }
  0x72   :  { %v2075_v61 = vand.u32 4294901760, %v160_v9 }
  0x73   :  { %652 = vmatmul.f32.gmra.mxu3 %v1963_v33  ;;  %576 = vmatmul.f32.gmra.mxu1 %v1969_v30  ;;  %v2648_v33 = vand.u32 4294901760, %v2041_v11 }
  0x74   :  { %2649 = vst [vmem:[#allocation29_spill] sm:$0xff] %v2075_v61  ;;  %v2087_v40 = vsub.f32 %v160_v9, %v2075_v61  ;;  %v467_v9 = vand.u32 4294901760, %v466_v2 }
  0x75   :  { %v306_v48 = vsub.f32 %v2041_v11, %v2648_v33  ;;  %v48_v33 = vld [vmem:[%s2526_s0 + $0x120] sm:$0xff] }
  0x76   :  { %2650 = vst [vmem:[#allocation30_spill] sm:$0xff] %v2087_v40  ;;  %v2595_v36 = vand.u32 4294901760, %v2087_v40 }
  0x77   :  { %452 = vmatmul.f32.gmra.mxu2 %v451_v45  ;;  %v2069_v45 = vsub.f32 %v100_v7, %v2053_v15  ;;  %v307_v53 = vand.u32 4294901760, %v306_v48  ;;  %v2081_v7 = vand.u32 4294901760, %v103_v3  ;;  %v29_v48 = vld [vmem:[%s2526_s0 + $0x88] sm:$0xff] }
  0x78   :  { %v106_v26 = vsel %vm53_vm1, %v29_v48, 0  ;;  %v474_v2 = vsub.f32 %v2087_v40, %v2595_v36 }
  0x79   :  { %300 = vmatmul.f32.gmra.mxu0 %v299_v5  ;;  %v163_v5 = vsel %vm53_vm1, %v48_v33, 0 }
  0x7a   :  { %v2103_v28 = vand.u32 4294901760, %v163_v5 }
  0x7b   :  { %656 = vmatmul.f32.gmra.mxu3 %v1991_v34  ;;  %580 = vmatmul.f32.gmra.mxu1 %v1997_v54  ;;  %v2651_v34 = vand.u32 4294901760, %v2069_v45 }
  0x7c   :  { %2652 = vst [vmem:[#allocation31_spill] sm:$0xff] %v2103_v28  ;;  %v2115_v48 = vsub.f32 %v163_v5, %v2103_v28  ;;  %v475_v5 = vand.u32 4294901760, %v474_v2 }
  0x7d   :  { %v314_v12 = vsub.f32 %v2069_v45, %v2651_v34  ;;  %v49_v34 = vld [vmem:[%s2526_s0 + $0x128] sm:$0xff] }
  0x7e   :  { %2653 = vst [vmem:[#allocation32_spill] sm:$0xff] %v2115_v48  ;;  %v2604_v36 = vand.u32 4294901760, %v2115_v48 }
  0x7f   :  { %460 = vmatmul.f32.gmra.mxu2 %v459_v60  ;;  %v2097_v60 = vsub.f32 %v103_v3, %v2081_v7  ;;  %v315_v33 = vand.u32 4294901760, %v314_v12  ;;  %v2109_v3 = vand.u32 4294901760, %v106_v26  ;;  %v30_v12 = vld [vmem:[%s2526_s0 + $0x90] sm:$0xff]  ;;  %s1582_s0 = smov [#allocation2]  }
  0x80   :  { %v109_v62 = vsel %vm53_vm1, %v30_v12, 0  ;;  %s1533_s4 = sshll.u32 %s1582_s0, 4  ;;  %s1534_s4 = int_to_ptr.vmem [resolvable:$true] %s1533_s4 }
  0x81   :  { %308 = vmatmul.f32.gmra.mxu0 %v307_v53  ;;  %v166_v53 = vsel %vm53_vm1, %v49_v34, 0  ;;  %v2134_v31 = vand.u32 4294901760, %v109_v62 }
  0x82   :  { %v2131_v40 = vand.u32 4294901760, %v166_v53 }
  0x83   :  { %660 = vmatmul.f32.gmra.mxu3 %v2019_v38  ;;  %584 = vmatmul.f32.gmra.mxu1 %v2025_v44  ;;  %v2654_v38 = vand.u32 4294901760, %v2097_v60 }
  0x84   :  { %2655 = vst [vmem:[#allocation33_spill] sm:$0xff] %v2131_v40  ;;  %v2142_v2 = vsub.f32 %v166_v53, %v2131_v40 }
  0x85   :  { %v322_v52 = vsub.f32 %v2097_v60, %v2654_v38 }
  0x86   :  { %2656 = vst [vmem:[#allocation34_spill] sm:$0xff] %v2142_v2 }
  0x87   :  { %468 = vmatmul.f32.gmra.mxu2 %v467_v9  ;;  %v2125_v9 = vsub.f32 %v106_v26, %v2109_v3  ;;  %v323_v34 = vand.u32 4294901760, %v322_v52  ;;  %v482_v26 = vsub.f32 %v2115_v48, %v2604_v36  ;;  %v2614_v36 = vand.u32 4294901760, %v2142_v2 }
  0x89   :  { %316 = vmatmul.f32.gmra.mxu0 %v315_v33  ;;  %v2611_v33 = vand.u32 4294901760, %v2125_v9 }
  0x8b   :  { %664 = vmatmul.f32.gmra.mxu3 %v2047_v18  ;;  %588 = vmatmul.f32.gmra.mxu1 %v2053_v15  ;;  %v330_v52 = vsub.f32 %v2125_v9, %v2611_v33  ;;  %v2150_v18 = vsub.f32 %v109_v62, %v2134_v31  ;;  %v490_v62 = vsub.f32 %v2142_v2, %v2614_v36 }
  0x8d   :  { %v331_v53 = vand.u32 4294901760, %v330_v52  ;;  %v2615_v48 = vand.u32 4294901760, %v2150_v18 }
  0x8e   :  { %v2136_v38 = vpop.f32.mrf.mxu0 }
  0x8f   :  { %476 = vmatmul.f32.gmra.mxu2 %v475_v5  ;;  %v483_v5 = vand.u32 4294901760, %v482_v26  ;;  %v338_v26 = vsub.f32 %v2150_v18, %v2615_v48 }
  0x90   :  { %v2144_v12 = vpop.f32.mrf.mxu1 }
  0x91   :  { %324 = vmatmul.f32.gmra.mxu0 %v323_v34 }
  0x92   :  { %v349_v41 = vpop.f32.mrf.mxu2 }
  0x93   :  { %668 = vmatmul.f32.gmra.mxu3 %v2075_v61  ;;  %592 = vmatmul.f32.gmra.mxu1 %v2081_v7  ;;  %v491_v61 = vand.u32 4294901760, %v490_v62 }
  0x96   :  { %v605_v10 = vpop.f32.mrf.mxu3  ;;  %v2156_v34 = vpop.f32.mrf.mxu0 }
  0x97   :  { %484 = vmatmul.f32.gmra.mxu2 %v483_v5  ;;  %v2158_v16 = vadd.f32 %v605_v10, %v349_v41  ;;  %v339_v5 = vand.u32 4294901760, %v338_v26 }
  0x98   :  { %v2163_v33 = vpop.f32.mrf.mxu1 }
  0x99   :  { %2657 = vst [vmem:[#allocation35_spill] sm:$0xff] %v2158_v16  ;;  %332 = vmatmul.f32.gmra.mxu0 %v331_v53 }
  0x9a   :  { %v357_v52 = vpop.f32.mrf.mxu2 }
  0x9b   :  { %672 = vmatmul.f32.gmra.mxu3 %v2103_v28  ;;  %596 = vmatmul.f32.gmra.mxu1 %v2109_v3 }
  0x9e   :  { %v609_v10 = vpop.f32.mrf.mxu3  ;;  %v2170_v41 = vpop.f32.mrf.mxu0 }
  0x9f   :  { %492 = vmatmul.f32.gmra.mxu2 %v491_v61  ;;  %v2172_v16 = vadd.f32 %v609_v10, %v357_v52  ;;  %v2660_v52 = vand.u32 4294901760, %v1654_v27 }
  0xa0   :  { %v2174_v36 = vpop.f32.mrf.mxu1 }
  0xa1   :  { %2658 = vst [vmem:[#allocation36_spill] sm:$0xff] %v2172_v16  ;;  %340 = vmatmul.f32.gmra.mxu0 %v339_v5  ;;  %v2693_v16 = vand.u32 4294901760, %v2097_v60 }
  0xa2   :  { %v365_v53 = vpop.f32.mrf.mxu2 }
  0xa3   :  { %676 = vmatmul.f32.gmra.mxu3 %v2131_v40  ;;  %600 = vmatmul.f32.gmra.mxu1 %v2134_v31 }
  0xa6   :  { %v613_v48 = vpop.f32.mrf.mxu3  ;;  %v2178_v2 = vpop.f32.mrf.mxu0 }
  0xa7   :  { %v2180_v62 = vadd.f32 %v613_v48, %v365_v53  ;;  %704 = vmatmul.f32.vlgmr.msrb.gmra.mxu2 %v1654_v27 }
  0xa8   :  { %v2183_v26 = vpop.f32.mrf.mxu1 }
  0xa9   :  { %2659 = vst [vmem:[#allocation37_spill] sm:$0xff] %v2180_v62  ;;  %1167 = vmatmul.f32.vlgmr.msrb.gmra.mxu0 %v1642_v20  ;;  %v2662_v62 = vand.u32 4294901760, %v1664_v35 }
  0xaa   :  { %v373_v61 = vpop.f32.mrf.mxu2 }
  0xab   :  { %915 = vmatmul.f32.vlgmr.msrb.gmra.mxu3 %v2660_v52  ;;  %1339 = vmatmul.f32.vlgmr.msrb.gmra.mxu1 %v1642_v20 }
  0xae   :  { %v617_v5 = vpop.f32.mrf.mxu3  ;;  %v2189_v10 = vpop.f32.mrf.mxu0 }
  0xaf   :  { %v2191_v40 = vadd.f32 %v617_v5, %v373_v61  ;;  %709 = vmatmul.f32.gmra.mxu2 %v1664_v35 }
  0xb0   :  { %v2194_v48 = vpop.f32.mrf.mxu1 }
  0xb1   :  { %2661 = vst [vmem:[#allocation38_spill] sm:$0xff] %v2191_v40  ;;  %1171 = vmatmul.f32.gmra.mxu0 %v1657_v29  ;;  %v2664_v40 = vand.u32 4294901760, %v1699_v55 }
  0xb2   :  { %v381_v53 = vpop.f32.mrf.mxu2 }
  0xb3   :  { %921 = vmatmul.f32.gmra.mxu3 %v2662_v62  ;;  %1343 = vmatmul.f32.gmra.mxu1 %v1657_v29 }
  0xb6   :  { %v621_v27 = vpop.f32.mrf.mxu3  ;;  %v2200_v52 = vpop.f32.mrf.mxu0 }
  0xb7   :  { %v2202_v20 = vadd.f32 %v621_v27, %v381_v53  ;;  %714 = vmatmul.f32.gmra.mxu2 %v1699_v55 }
  0xb8   :  { %v2205_v61 = vpop.f32.mrf.mxu1 }
  0xb9   :  { %2663 = vst [vmem:[#allocation39_spill] sm:$0xff] %v2202_v20  ;;  %1175 = vmatmul.f32.gmra.mxu0 %v1689_v51  ;;  %v2666_v20 = vand.u32 4294901760, %v1733_v6 }
  0xba   :  { %v389_v5 = vpop.f32.mrf.mxu2 }
  0xbb   :  { %927 = vmatmul.f32.gmra.mxu3 %v2664_v40  ;;  %1347 = vmatmul.f32.gmra.mxu1 %v1689_v51 }
  0xbe   :  { %v625_v35 = vpop.f32.mrf.mxu3  ;;  %v2211_v62 = vpop.f32.mrf.mxu0 }
  0xbf   :  { %v2213_v29 = vadd.f32 %v625_v35, %v389_v5  ;;  %719 = vmatmul.f32.gmra.mxu2 %v1733_v6 }
  0xc0   :  { %v2216_v53 = vpop.f32.mrf.mxu1 }
  0xc1   :  { %2665 = vst [vmem:[#allocation40_spill] sm:$0xff] %v2213_v29  ;;  %1179 = vmatmul.f32.gmra.mxu0 %v1713_v63  ;;  %v2668_v29 = vand.u32 4294901760, %v1761_v23 }
  0xc2   :  { %v397_v27 = vpop.f32.mrf.mxu2 }
  0xc3   :  { %933 = vmatmul.f32.gmra.mxu3 %v2666_v20  ;;  %1351 = vmatmul.f32.gmra.mxu1 %v1713_v63 }
  0xc6   :  { %v629_v55 = vpop.f32.mrf.mxu3  ;;  %v2222_v40 = vpop.f32.mrf.mxu0 }
  0xc7   :  { %v2224_v51 = vadd.f32 %v629_v55, %v397_v27  ;;  %724 = vmatmul.f32.gmra.mxu2 %v1761_v23 }
  0xc8   :  { %v2227_v5 = vpop.f32.mrf.mxu1 }
  0xc9   :  { %2667 = vst [vmem:[#allocation41_spill] sm:$0xff] %v2224_v51  ;;  %1183 = vmatmul.f32.gmra.mxu0 %v1745_v13  ;;  %v2670_v51 = vand.u32 4294901760, %v1789_v46 }
  0xca   :  { %v405_v35 = vpop.f32.mrf.mxu2 }
  0xcb   :  { %939 = vmatmul.f32.gmra.mxu3 %v2668_v29  ;;  %1355 = vmatmul.f32.gmra.mxu1 %v1745_v13 }
  0xce   :  { %v633_v6 = vpop.f32.mrf.mxu3  ;;  %v2233_v20 = vpop.f32.mrf.mxu0 }
  0xcf   :  { %v2235_v63 = vadd.f32 %v633_v6, %v405_v35  ;;  %729 = vmatmul.f32.gmra.mxu2 %v1789_v46 }
  0xd0   :  { %v2238_v27 = vpop.f32.mrf.mxu1 }
  0xd1   :  { %2669 = vst [vmem:[#allocation42_spill] sm:$0xff] %v2235_v63  ;;  %1187 = vmatmul.f32.gmra.mxu0 %v1773_v37  ;;  %v2672_v63 = vand.u32 4294901760, %v1817_v4 }
  0xd2   :  { %v413_v55 = vpop.f32.mrf.mxu2 }
  0xd3   :  { %945 = vmatmul.f32.gmra.mxu3 %v2670_v51  ;;  %1359 = vmatmul.f32.gmra.mxu1 %v1773_v37 }
  0xd6   :  { %v637_v23 = vpop.f32.mrf.mxu3  ;;  %v2244_v29 = vpop.f32.mrf.mxu0 }
  0xd7   :  { %v2246_v13 = vadd.f32 %v637_v23, %v413_v55  ;;  %734 = vmatmul.f32.gmra.mxu2 %v1817_v4 }
  0xd8   :  { %v2249_v35 = vpop.f32.mrf.mxu1 }
  0xd9   :  { %2671 = vst [vmem:[#allocation43_spill] sm:$0xff] %v2246_v13  ;;  %1191 = vmatmul.f32.gmra.mxu0 %v1801_v57  ;;  %v2674_v13 = vand.u32 4294901760, %v1845_v42 }
  0xda   :  { %v421_v6 = vpop.f32.mrf.mxu2 }
  0xdb   :  { %951 = vmatmul.f32.gmra.mxu3 %v2672_v63  ;;  %1363 = vmatmul.f32.gmra.mxu1 %v1801_v57 }
  0xde   :  { %v641_v46 = vpop.f32.mrf.mxu3  ;;  %v2255_v51 = vpop.f32.mrf.mxu0 }
  0xdf   :  { %v2257_v37 = vadd.f32 %v641_v46, %v421_v6  ;;  %739 = vmatmul.f32.gmra.mxu2 %v1845_v42 }
  0xe0   :  { %v2260_v55 = vpop.f32.mrf.mxu1 }
  0xe1   :  { %2673 = vst [vmem:[#allocation44_spill] sm:$0xff] %v2257_v37  ;;  %1195 = vmatmul.f32.gmra.mxu0 %v1829_v21  ;;  %v2676_v37 = vand.u32 4294901760, %v1873_v19 }
  0xe2   :  { %v429_v23 = vpop.f32.mrf.mxu2 }
  0xe3   :  { %957 = vmatmul.f32.gmra.mxu3 %v2674_v13  ;;  %1367 = vmatmul.f32.gmra.mxu1 %v1829_v21 }
  0xe6   :  { %v645_v4 = vpop.f32.mrf.mxu3  ;;  %v2266_v63 = vpop.f32.mrf.mxu0 }
  0xe7   :  { %v2268_v57 = vadd.f32 %v645_v4, %v429_v23  ;;  %744 = vmatmul.f32.gmra.mxu2 %v1873_v19 }
  0xe8   :  { %v2271_v6 = vpop.f32.mrf.mxu1 }
  0xe9   :  { %2675 = vst [vmem:[#allocation45_spill] sm:$0xff] %v2268_v57  ;;  %1199 = vmatmul.f32.gmra.mxu0 %v1857_v0  ;;  %v2678_v57 = vand.u32 4294901760, %v1901_v32 }
  0xea   :  { %v437_v46 = vpop.f32.mrf.mxu2 }
  0xeb   :  { %963 = vmatmul.f32.gmra.mxu3 %v2676_v37  ;;  %1371 = vmatmul.f32.gmra.mxu1 %v1857_v0 }
  0xee   :  { %v649_v42 = vpop.f32.mrf.mxu3  ;;  %v2277_v13 = vpop.f32.mrf.mxu0 }
  0xef   :  { %v2279_v21 = vadd.f32 %v649_v42, %v437_v46  ;;  %749 = vmatmul.f32.gmra.mxu2 %v1901_v32 }
  0xf0   :  { %v2282_v23 = vpop.f32.mrf.mxu1 }
  0xf1   :  { %2677 = vst [vmem:[#allocation46_spill] sm:$0xff] %v2279_v21  ;;  %1203 = vmatmul.f32.gmra.mxu0 %v1885_v43  ;;  %v2680_v21 = vand.u32 4294901760, %v1929_v8 }
  0xf2   :  { %v445_v4 = vpop.f32.mrf.mxu2 }
  0xf3   :  { %969 = vmatmul.f32.gmra.mxu3 %v2678_v57  ;;  %1375 = vmatmul.f32.gmra.mxu1 %v1885_v43 }
  0xf6   :  { %v653_v19 = vpop.f32.mrf.mxu3  ;;  %v2288_v37 = vpop.f32.mrf.mxu0 }
  0xf7   :  { %v2290_v0 = vadd.f32 %v653_v19, %v445_v4  ;;  %754 = vmatmul.f32.gmra.mxu2 %v1929_v8 }
  0xf8   :  { %v2293_v46 = vpop.f32.mrf.mxu1 }
  0xf9   :  { %2679 = vst [vmem:[#allocation47_spill] sm:$0xff] %v2290_v0  ;;  %1207 = vmatmul.f32.gmra.mxu0 %v1913_v24  ;;  %v2682_v0 = vand.u32 4294901760, %v1957_v47 }
  0xfa   :  { %v453_v42 = vpop.f32.mrf.mxu2 }
  0xfb   :  { %975 = vmatmul.f32.gmra.mxu3 %v2680_v21  ;;  %1379 = vmatmul.f32.gmra.mxu1 %v1913_v24 }
  0xfe   :  { %v657_v32 = vpop.f32.mrf.mxu3  ;;  %v2299_v57 = vpop.f32.mrf.mxu0 }
  0xff   :  { %v2301_v43 = vadd.f32 %v657_v32, %v453_v42  ;;  %759 = vmatmul.f32.gmra.mxu2 %v1957_v47 }
 0x100   :  { %v2304_v4 = vpop.f32.mrf.mxu1 }
 0x101   :  { %2681 = vst [vmem:[#allocation48_spill] sm:$0xff] %v2301_v43  ;;  %1211 = vmatmul.f32.gmra.mxu0 %v1941_v49  ;;  %v2684_v43 = vand.u32 4294901760, %v1985_v58 }
 0x102   :  { %v461_v19 = vpop.f32.mrf.mxu2 }
 0x103   :  { %981 = vmatmul.f32.gmra.mxu3 %v2682_v0  ;;  %1383 = vmatmul.f32.gmra.mxu1 %v1941_v49 }
 0x106   :  { %v661_v8 = vpop.f32.mrf.mxu3  ;;  %v2310_v21 = vpop.f32.mrf.mxu0 }
 0x107   :  { %v2312_v24 = vadd.f32 %v661_v8, %v461_v19  ;;  %764 = vmatmul.f32.gmra.mxu2 %v1985_v58 }
 0x108   :  { %v2315_v42 = vpop.f32.mrf.mxu1 }
 0x109   :  { %2683 = vst [vmem:[#allocation49_spill] sm:$0xff] %v2312_v24  ;;  %1215 = vmatmul.f32.gmra.mxu0 %v1969_v30  ;;  %v2686_v24 = vand.u32 4294901760, %v2013_v56 }
 0x10a   :  { %v469_v32 = vpop.f32.mrf.mxu2 }
 0x10b   :  { %987 = vmatmul.f32.gmra.mxu3 %v2684_v43  ;;  %1387 = vmatmul.f32.gmra.mxu1 %v1969_v30 }
 0x10e   :  { %v665_v47 = vpop.f32.mrf.mxu3  ;;  %v2321_v0 = vpop.f32.mrf.mxu0 }
 0x10f   :  { %v2323_v49 = vadd.f32 %v665_v47, %v469_v32  ;;  %769 = vmatmul.f32.gmra.mxu2 %v2013_v56 }
 0x110   :  { %v2326_v19 = vpop.f32.mrf.mxu1 }
 0x111   :  { %2685 = vst [vmem:[#allocation50_spill] sm:$0xff] %v2323_v49  ;;  %1219 = vmatmul.f32.gmra.mxu0 %v1997_v54  ;;  %v2688_v49 = vand.u32 4294901760, %v2041_v11 }
 0x112   :  { %v477_v8 = vpop.f32.mrf.mxu2 }
 0x113   :  { %993 = vmatmul.f32.gmra.mxu3 %v2686_v24  ;;  %1391 = vmatmul.f32.gmra.mxu1 %v1997_v54 }
 0x116   :  { %v669_v58 = vpop.f32.mrf.mxu3  ;;  %v2332_v43 = vpop.f32.mrf.mxu0 }
 0x117   :  { %v2334_v30 = vadd.f32 %v669_v58, %v477_v8  ;;  %774 = vmatmul.f32.gmra.mxu2 %v2041_v11 }
 0x118   :  { %v2337_v32 = vpop.f32.mrf.mxu1 }
 0x119   :  { %2687 = vst [vmem:[#allocation51_spill] sm:$0xff] %v2334_v30  ;;  %1223 = vmatmul.f32.gmra.mxu0 %v2025_v44  ;;  %v2691_v30 = vand.u32 4294901760, %v2069_v45 }
 0x11a   :  { %v485_v47 = vpop.f32.mrf.mxu2 }
 0x11b   :  { %999 = vmatmul.f32.gmra.mxu3 %v2688_v49  ;;  %1395 = vmatmul.f32.gmra.mxu1 %v2025_v44 }
 0x11e   :  { %v673_v56 = vpop.f32.mrf.mxu3  ;;  %v2343_v24 = vpop.f32.mrf.mxu0 }
 0x11f   :  { %v2345_v54 = vadd.f32 %v673_v56, %v485_v47  ;;  %779 = vmatmul.f32.gmra.mxu2 %v2069_v45 }
 0x120   :  { %v2348_v8 = vpop.f32.mrf.mxu1 }
 0x121   :  { %2689 = vst [vmem:[#allocation52_spill] sm:$0xff] %v2345_v54  ;;  %1227 = vmatmul.f32.gmra.mxu0 %v2053_v15  ;;  %v530_v54 = vadd.f32 %v2144_v12, %v2136_v38 }
 0x122   :  { %2690 = vst [vmem:[#allocation53_spill] sm:$0xff] %v2348_v8  ;;  %v493_v58 = vpop.f32.mrf.mxu2  ;;  %v534_v8 = vadd.f32 %v2163_v33, %v2156_v34  ;;  %v538_v33 = vadd.f32 %v2174_v36, %v2170_v41  ;;  %v542_v36 = vadd.f32 %v2183_v26, %v2178_v2  ;;  %v546_v2 = vadd.f32 %v2194_v48, %v2189_v10 }
 0x123   :  { %1005 = vmatmul.f32.gmra.mxu3 %v2691_v30  ;;  %1399 = vmatmul.f32.gmra.mxu1 %v2053_v15  ;;  %v550_v10 = vadd.f32 %v2205_v61, %v2200_v52  ;;  %v554_v52 = vadd.f32 %v2216_v53, %v2211_v62  ;;  %v558_v62 = vadd.f32 %v2227_v5, %v2222_v40 }
 0x124   :  { %v562_v40 = vadd.f32 %v2238_v27, %v2233_v20  ;;  %v566_v20 = vadd.f32 %v2249_v35, %v2244_v29  ;;  %v570_v29 = vadd.f32 %v2260_v55, %v2255_v51  ;;  %v574_v51 = vadd.f32 %v2271_v6, %v2266_v63 }
 0x125   :  { %v578_v63 = vadd.f32 %v2282_v23, %v2277_v13  ;;  %v582_v13 = vadd.f32 %v2293_v46, %v2288_v37  ;;  %v586_v37 = vadd.f32 %v2304_v4, %v2299_v57  ;;  %v590_v57 = vadd.f32 %v2315_v42, %v2310_v21 }
 0x126   :  { %v677_v11 = vpop.f32.mrf.mxu3  ;;  %v1168_v49 = vpop.f32.mrf.mxu0  ;;  %v594_v21 = vadd.f32 %v2326_v19, %v2321_v0  ;;  %v598_v0 = vadd.f32 %v2337_v32, %v2332_v43 }
 0x127   :  { %v2354_v44 = vadd.f32 %v677_v11, %v493_v58  ;;  %784 = vmatmul.f32.gmra.mxu2 %v2097_v60  ;;  %v2694_v60 = vand.u32 4294901760, %v2125_v9 }
 0x128   :  { %v1340_v47 = vpop.f32.mrf.mxu1 }
 0x129   :  { %2692 = vst [vmem:[#allocation54_spill] sm:$0xff] %v2354_v44  ;;  %1231 = vmatmul.f32.gmra.mxu0 %v2081_v7  ;;  %v2735_v43 = vld [vmem:[#allocation53_spill] sm:$0xff] }
 0x12a   :  { %v705_v56 = vpop.f32.mrf.mxu2  ;;  %v602_v32 = vadd.f32 %v2735_v43, %v2343_v24 }
 0x12b   :  { %1011 = vmatmul.f32.gmra.mxu3 %v2693_v16  ;;  %1403 = vmatmul.f32.gmra.mxu1 %v2081_v7  ;;  %v706_v45 = vadd.f32 %v705_v56, %v530_v54 }
 0x12e   :  { %v916_v15 = vpop.f32.mrf.mxu3  ;;  %v1172_v30 = vpop.f32.mrf.mxu0 }
 0x12f   :  { %789 = vmatmul.f32.gmra.mxu2 %v2125_v9  ;;  %v917_v58 = vadd.f32 %v916_v15, %v706_v45  ;;  %v2695_v9 = vand.u32 4294901760, %v2150_v18 }
 0x130   :  { %v1344_v11 = vpop.f32.mrf.mxu1 }
 0x131   :  { %v1169_v44 = vadd.f32 %v1168_v49, %v917_v58  ;;  %1235 = vmatmul.f32.gmra.mxu0 %v2109_v3 }
 0x132   :  { %v710_v28 = vpop.f32.mrf.mxu2 }
 0x133   :  { %v1341_v38 = vadd.f32 %v1340_v47, %v1169_v44  ;;  %1017 = vmatmul.f32.gmra.mxu3 %v2694_v60  ;;  %1407 = vmatmul.f32.gmra.mxu1 %v2109_v3  ;;  %v711_v16 = vadd.f32 %v710_v28, %v534_v8 }
 0x135   :  { %1491 = vst [vmem:[#allocation2] sm:$0xff] %v1341_v38 }
 0x136   :  { %v922_v7 = vpop.f32.mrf.mxu3  ;;  %v1176_v12 = vpop.f32.mrf.mxu0 }
 0x137   :  { %794 = vmatmul.f32.gmra.mxu2 %v2150_v18  ;;  %v923_v54 = vadd.f32 %v922_v7, %v711_v16  ;;  %v2696_v18 = vand.u32 4294901760, %v1646_v22 }
 0x138   :  { %v1348_v49 = vpop.f32.mrf.mxu1 }
 0x139   :  { %v1173_v56 = vadd.f32 %v1172_v30, %v923_v54  ;;  %1239 = vmatmul.f32.gmra.mxu0 %v2134_v31 }
 0x13a   :  { %v715_v45 = vpop.f32.mrf.mxu2 }
 0x13b   :  { %v1345_v34 = vadd.f32 %v1344_v11, %v1173_v56  ;;  %1023 = vmatmul.f32.gmra.mxu3 %v2695_v9  ;;  %1411 = vmatmul.f32.gmra.mxu1 %v2134_v31  ;;  %v716_v28 = vadd.f32 %v715_v45, %v538_v33 }
 0x13d   :  { %1492 = vst [vmem:[#allocation2 + $0x8] sm:$0xff] %v1345_v34 }
 0x13e   :  { %v928_v3 = vpop.f32.mrf.mxu3  ;;  %v1180_v8 = vpop.f32.mrf.mxu0 }
 0x13f   :  { %799 = vmatmul.f32.gmra.mxu2 %v1646_v22  ;;  %v929_v44 = vadd.f32 %v928_v3, %v716_v28  ;;  %v2697_v22 = vand.u32 4294901760, %v1649_v25 }
 0x140   :  { %v1352_v47 = vpop.f32.mrf.mxu1 }
 0x141   :  { %v1177_v15 = vadd.f32 %v1176_v12, %v929_v44  ;;  %1243 = vmatmul.f32.gmra.mxu0 %v1630_v14 }
 0x142   :  { %v720_v30 = vpop.f32.mrf.mxu2 }
 0x143   :  { %v1349_v41 = vadd.f32 %v1348_v49, %v1177_v15  ;;  %1029 = vmatmul.f32.gmra.mxu3 %v2696_v18  ;;  %1415 = vmatmul.f32.gmra.mxu1 %v1630_v14  ;;  %v721_v31 = vadd.f32 %v720_v30, %v542_v36  ;;  %v2700_v30 = vld [vmem:[#allocation6_spill] sm:$0xff] }
 0x145   :  { %1493 = vst [vmem:[#allocation2 + $0x10] sm:$0xff] %v1349_v41 }
 0x146   :  { %v934_v58 = vpop.f32.mrf.mxu3  ;;  %v1184_v11 = vpop.f32.mrf.mxu0 }
 0x147   :  { %804 = vmatmul.f32.gmra.mxu2 %v1649_v25  ;;  %v935_v38 = vadd.f32 %v934_v58, %v721_v31  ;;  %v2698_v25 = vand.u32 4294901760, %v1687_v50  ;;  %v2701_v31 = vld [vmem:[#allocation5_spill] sm:$0xff] }
 0x148   :  { %v1356_v60 = vpop.f32.mrf.mxu1 }
 0x149   :  { %v1181_v16 = vadd.f32 %v1180_v8, %v935_v38  ;;  %1247 = vmatmul.f32.gmra.mxu0 %v1634_v17 }
 0x14a   :  { %v725_v7 = vpop.f32.mrf.mxu2 }
 0x14b   :  { %v1353_v26 = vadd.f32 %v1352_v47, %v1181_v16  ;;  %1035 = vmatmul.f32.gmra.mxu3 %v2697_v22  ;;  %1419 = vmatmul.f32.gmra.mxu1 %v1634_v17  ;;  %v726_v14 = vadd.f32 %v725_v7, %v546_v2 }
 0x14d   :  { %1494 = vst [vmem:[#allocation2 + $0x18] sm:$0xff] %v1353_v26  ;;  %v2704_v26 = vld [vmem:[#allocation7_spill] sm:$0xff] }
 0x14e   :  { %v940_v12 = vpop.f32.mrf.mxu3  ;;  %v1188_v54 = vpop.f32.mrf.mxu0 }
 0x14f   :  { %809 = vmatmul.f32.gmra.mxu2 %v1687_v50  ;;  %v941_v49 = vadd.f32 %v940_v12, %v726_v14  ;;  %v2699_v50 = vand.u32 4294901760, %v1721_v1 }
 0x150   :  { %v1360_v56 = vpop.f32.mrf.mxu1 }
 0x151   :  { %v1185_v45 = vadd.f32 %v1184_v11, %v941_v49  ;;  %1251 = vmatmul.f32.gmra.mxu0 %v1673_v39 }
 0x152   :  { %v730_v33 = vpop.f32.mrf.mxu2 }
 0x153   :  { %v1357_v48 = vadd.f32 %v1356_v60, %v1185_v45  ;;  %1041 = vmatmul.f32.gmra.mxu3 %v2698_v25  ;;  %1423 = vmatmul.f32.gmra.mxu1 %v1673_v39  ;;  %v731_v17 = vadd.f32 %v730_v33, %v550_v10  ;;  %v2703_v60 = vld [vmem:[#allocation8_spill] sm:$0xff] }
 0x154   :  { %v2705_v14 = vand.u32 4294901760, %v2703_v60 }
 0x155   :  { %1495 = vst [vmem:[#allocation2 + $0x20] sm:$0xff] %v1357_v48  ;;  %v2707_v48 = vld [vmem:[#allocation9_spill] sm:$0xff] }
 0x156   :  { %v946_v34 = vpop.f32.mrf.mxu3  ;;  %v1192_v9 = vpop.f32.mrf.mxu0 }
 0x157   :  { %814 = vmatmul.f32.gmra.mxu2 %v1721_v1  ;;  %v947_v28 = vadd.f32 %v946_v34, %v731_v17  ;;  %v2702_v1 = vand.u32 4294901760, %v2700_v30 }
 0x158   :  { %v1364_v3 = vpop.f32.mrf.mxu1 }
 0x159   :  { %v1189_v8 = vadd.f32 %v1188_v54, %v947_v28  ;;  %1255 = vmatmul.f32.gmra.mxu0 %v1705_v59 }
 0x15a   :  { %v735_v44 = vpop.f32.mrf.mxu2 }
 0x15b   :  { %v1361_v61 = vadd.f32 %v1360_v56, %v1189_v8  ;;  %1047 = vmatmul.f32.gmra.mxu3 %v2699_v50  ;;  %1427 = vmatmul.f32.gmra.mxu1 %v1705_v59  ;;  %v736_v39 = vadd.f32 %v735_v44, %v554_v52  ;;  %v2706_v56 = vld [vmem:[#allocation10_spill] sm:$0xff] }
 0x15c   :  { %v2708_v17 = vand.u32 4294901760, %v2706_v56 }
 0x15d   :  { %1496 = vst [vmem:[#allocation2 + $0x28] sm:$0xff] %v1361_v61  ;;  %v2710_v61 = vld [vmem:[#allocation11_spill] sm:$0xff] }
 0x15e   :  { %v952_v47 = vpop.f32.mrf.mxu3  ;;  %v1196_v15 = vpop.f32.mrf.mxu0 }
 0x15f   :  { %819 = vmatmul.f32.gmra.mxu2 %v2700_v30  ;;  %v953_v36 = vadd.f32 %v952_v47, %v736_v39 }
 0x160   :  { %v1368_v41 = vpop.f32.mrf.mxu1 }
 0x161   :  { %v1193_v18 = vadd.f32 %v1192_v9, %v953_v36  ;;  %1259 = vmatmul.f32.gmra.mxu0 %v2701_v31  ;;  %v2712_v36 = vld [vmem:[#allocation14_spill] sm:$0xff] }
 0x162   :  { %v740_v58 = vpop.f32.mrf.mxu2 }
 0x163   :  { %v1365_v53 = vadd.f32 %v1364_v3, %v1193_v18  ;;  %1053 = vmatmul.f32.gmra.mxu3 %v2702_v1  ;;  %1431 = vmatmul.f32.gmra.mxu1 %v2701_v31  ;;  %v741_v59 = vadd.f32 %v740_v58, %v558_v62  ;;  %v2709_v3 = vld [vmem:[#allocation12_spill] sm:$0xff]  ;;  %v2713_v58 = vld [vmem:[#allocation13_spill] sm:$0xff] }
 0x164   :  { %v2711_v39 = vand.u32 4294901760, %v2709_v3 }
 0x165   :  { %1497 = vst [vmem:[#allocation2 + $0x30] sm:$0xff] %v1365_v53  ;;  %v2714_v53 = vand.u32 4294901760, %v2712_v36 }
 0x166   :  { %v958_v11 = vpop.f32.mrf.mxu3  ;;  %v1200_v38 = vpop.f32.mrf.mxu0 }
 0x167   :  { %824 = vmatmul.f32.gmra.mxu2 %v2703_v60  ;;  %v959_v16 = vadd.f32 %v958_v11, %v741_v59 }
 0x168   :  { %v1372_v7 = vpop.f32.mrf.mxu1 }
 0x169   :  { %v1197_v2 = vadd.f32 %v1196_v15, %v959_v16  ;;  %1263 = vmatmul.f32.gmra.mxu0 %v2704_v26 }
 0x16a   :  { %v745_v22 = vpop.f32.mrf.mxu2 }
 0x16b   :  { %v1369_v5 = vadd.f32 %v1368_v41, %v1197_v2  ;;  %1059 = vmatmul.f32.gmra.mxu3 %v2705_v14  ;;  %1435 = vmatmul.f32.gmra.mxu1 %v2704_v26  ;;  %v746_v12 = vadd.f32 %v745_v22, %v562_v40  ;;  %v2716_v2 = vld [vmem:[#allocation15_spill] sm:$0xff] }
 0x16d   :  { %1498 = vst [vmem:[#allocation2 + $0x38] sm:$0xff] %v1369_v5 }
 0x16e   :  { %v964_v54 = vpop.f32.mrf.mxu3  ;;  %v1204_v49 = vpop.f32.mrf.mxu0 }
 0x16f   :  { %829 = vmatmul.f32.gmra.mxu2 %v2706_v56  ;;  %v965_v45 = vadd.f32 %v964_v54, %v746_v12  ;;  %v2718_v12 = vld [vmem:[#allocation18_spill] sm:$0xff] }
 0x170   :  { %v1376_v33 = vpop.f32.mrf.mxu1 }
 0x171   :  { %v1201_v10 = vadd.f32 %v1200_v38, %v965_v45  ;;  %1267 = vmatmul.f32.gmra.mxu0 %v2707_v48  ;;  %v2715_v38 = vld [vmem:[#allocation16_spill] sm:$0xff]  ;;  %v2719_v45 = vld [vmem:[#allocation17_spill] sm:$0xff] }
 0x172   :  { %v750_v25 = vpop.f32.mrf.mxu2  ;;  %v2717_v22 = vand.u32 4294901760, %v2715_v38 }
 0x173   :  { %v1373_v27 = vadd.f32 %v1372_v7, %v1201_v10  ;;  %1065 = vmatmul.f32.gmra.mxu3 %v2708_v17  ;;  %1439 = vmatmul.f32.gmra.mxu1 %v2707_v48  ;;  %v751_v34 = vadd.f32 %v750_v25, %v566_v20  ;;  %v2720_v10 = vand.u32 4294901760, %v2718_v12 }
 0x175   :  { %1499 = vst [vmem:[#allocation2 + $0x40] sm:$0xff] %v1373_v27  ;;  %v2721_v27 = vld [vmem:[#allocation20_spill] sm:$0xff] }
 0x176   :  { %v970_v9 = vpop.f32.mrf.mxu3  ;;  %v1208_v28 = vpop.f32.mrf.mxu0 }
 0x177   :  { %834 = vmatmul.f32.gmra.mxu2 %v2709_v3  ;;  %v971_v8 = vadd.f32 %v970_v9, %v751_v34 }
 0x178   :  { %v1380_v44 = vpop.f32.mrf.mxu1 }
 0x179   :  { %v1205_v52 = vadd.f32 %v1204_v49, %v971_v8  ;;  %1271 = vmatmul.f32.gmra.mxu0 %v2710_v61  ;;  %v2723_v8 = vand.u32 4294901760, %v2721_v27 }
 0x17a   :  { %v755_v50 = vpop.f32.mrf.mxu2 }
 0x17b   :  { %v1377_v35 = vadd.f32 %v1376_v33, %v1205_v52  ;;  %1071 = vmatmul.f32.gmra.mxu3 %v2711_v39  ;;  %1443 = vmatmul.f32.gmra.mxu1 %v2710_v61  ;;  %v756_v47 = vadd.f32 %v755_v50, %v570_v29  ;;  %v2724_v50 = vld [vmem:[#allocation22_spill] sm:$0xff] }
 0x17d   :  { %1500 = vst [vmem:[#allocation2 + $0x48] sm:$0xff] %v1377_v35 }
 0x17e   :  { %v976_v15 = vpop.f32.mrf.mxu3  ;;  %v1212_v30 = vpop.f32.mrf.mxu0 }
 0x17f   :  { %839 = vmatmul.f32.gmra.mxu2 %v2712_v36  ;;  %v977_v41 = vadd.f32 %v976_v15, %v756_v47  ;;  %v2725_v47 = vld [vmem:[#allocation21_spill] sm:$0xff] }
 0x180   :  { %v1384_v18 = vpop.f32.mrf.mxu1 }
 0x181   :  { %v1209_v31 = vadd.f32 %v1208_v28, %v977_v41  ;;  %1275 = vmatmul.f32.gmra.mxu0 %v2713_v58  ;;  %v2722_v28 = vld [vmem:[#allocation19_spill] sm:$0xff] }
 0x182   :  { %v760_v62 = vpop.f32.mrf.mxu2 }
 0x183   :  { %v1381_v55 = vadd.f32 %v1380_v44, %v1209_v31  ;;  %1077 = vmatmul.f32.gmra.mxu3 %v2714_v53  ;;  %1447 = vmatmul.f32.gmra.mxu1 %v2713_v58  ;;  %v761_v1 = vadd.f32 %v760_v62, %v574_v51  ;;  %v2727_v31 = vld [vmem:[#allocation24_spill] sm:$0xff] }
 0x185   :  { %1501 = vst [vmem:[#allocation2 + $0x50] sm:$0xff] %v1381_v55  ;;  %v2728_v55 = vld [vmem:[#allocation23_spill] sm:$0xff] }
 0x186   :  { %v982_v59 = vpop.f32.mrf.mxu3  ;;  %v1216_v11 = vpop.f32.mrf.mxu0 }
 0x187   :  { %844 = vmatmul.f32.gmra.mxu2 %v2715_v38  ;;  %v983_v60 = vadd.f32 %v982_v59, %v761_v1  ;;  %v2729_v1 = vand.u32 4294901760, %v2727_v31 }
 0x188   :  { %v1388_v16 = vpop.f32.mrf.mxu1 }
 0x189   :  { %v1213_v7 = vadd.f32 %v1212_v30, %v983_v60  ;;  %1279 = vmatmul.f32.gmra.mxu0 %v2716_v2  ;;  %v2726_v30 = vand.u32 4294901760, %v2724_v50  ;;  %v2730_v60 = vld [vmem:[#allocation26_spill] sm:$0xff] }
 0x18a   :  { %v765_v26 = vpop.f32.mrf.mxu2 }
 0x18b   :  { %v1385_v6 = vadd.f32 %v1384_v18, %v1213_v7  ;;  %1083 = vmatmul.f32.gmra.mxu3 %v2717_v22  ;;  %1451 = vmatmul.f32.gmra.mxu1 %v2716_v2  ;;  %v766_v40 = vadd.f32 %v765_v26, %v578_v63  ;;  %v2731_v26 = vld [vmem:[#allocation25_spill] sm:$0xff] }
 0x18d   :  { %1502 = vst [vmem:[#allocation2 + $0x58] sm:$0xff] %v1385_v6  ;;  %v2732_v6 = vand.u32 4294901760, %v2730_v60 }
 0x18e   :  { %v988_v5 = vpop.f32.mrf.mxu3  ;;  %v1220_v14 = vpop.f32.mrf.mxu0 }
 0x18f   :  { %849 = vmatmul.f32.gmra.mxu2 %v2718_v12  ;;  %v989_v54 = vadd.f32 %v988_v5, %v766_v40 }
 0x190   :  { %v1392_v49 = vpop.f32.mrf.mxu1 }
 0x191   :  { %v1217_v56 = vadd.f32 %v1216_v11, %v989_v54  ;;  %1283 = vmatmul.f32.gmra.mxu0 %v2719_v45 }
 0x192   :  { %v770_v33 = vpop.f32.mrf.mxu2 }
 0x193   :  { %v1389_v23 = vadd.f32 %v1388_v16, %v1217_v56  ;;  %1089 = vmatmul.f32.gmra.mxu3 %v2720_v10  ;;  %1455 = vmatmul.f32.gmra.mxu1 %v2719_v45  ;;  %v771_v48 = vadd.f32 %v770_v33, %v582_v13  ;;  %v2734_v56 = vld [vmem:[#allocation27_spill] sm:$0xff] }
 0x195   :  { %1503 = vst [vmem:[#allocation2 + $0x60] sm:$0xff] %v1389_v23 }
 0x196   :  { %v994_v25 = vpop.f32.mrf.mxu3  ;;  %v1224_v20 = vpop.f32.mrf.mxu0 }
 0x197   :  { %854 = vmatmul.f32.gmra.mxu2 %v2721_v27  ;;  %v995_v17 = vadd.f32 %v994_v25, %v771_v48  ;;  %v2737_v25 = vld [vmem:[#allocation30_spill] sm:$0xff] }
 0x198   :  { %v1396_v34 = vpop.f32.mrf.mxu1  ;;  %v2739_v24 = vand.u32 4294901760, %v2737_v25 }
 0x199   :  { %v1221_v9 = vadd.f32 %v1220_v14, %v995_v17  ;;  %1287 = vmatmul.f32.gmra.mxu0 %v2722_v28  ;;  %v2733_v14 = vld [vmem:[#allocation28_spill] sm:$0xff] }
 0x19a   :  { %v775_v3 = vpop.f32.mrf.mxu2  ;;  %v2736_v13 = vand.u32 4294901760, %v2733_v14 }
 0x19b   :  { %v1393_v46 = vadd.f32 %v1392_v49, %v1221_v9  ;;  %1095 = vmatmul.f32.gmra.mxu3 %v2723_v8  ;;  %1459 = vmatmul.f32.gmra.mxu1 %v2722_v28  ;;  %v776_v44 = vadd.f32 %v775_v3, %v586_v37  ;;  %v2740_v3 = vld [vmem:[#allocation35_spill] sm:$0xff] }
 0x19d   :  { %1504 = vst [vmem:[#allocation2 + $0x68] sm:$0xff] %v1393_v46 }
 0x19e   :  { %v1000_v52 = vpop.f32.mrf.mxu3  ;;  %v1228_v61 = vpop.f32.mrf.mxu0 }
 0x19f   :  { %859 = vmatmul.f32.gmra.mxu2 %v2724_v50  ;;  %v1001_v29 = vadd.f32 %v1000_v52, %v776_v44  ;;  %v2741_v44 = vld [vmem:[#allocation32_spill] sm:$0xff] }
 0x1a0   :  { %v1400_v35 = vpop.f32.mrf.mxu1 }
 0x1a1   :  { %v1225_v39 = vadd.f32 %v1224_v20, %v1001_v29  ;;  %1291 = vmatmul.f32.gmra.mxu0 %v2725_v47  ;;  %v2742_v29 = vld [vmem:[#allocation31_spill] sm:$0xff] }
 0x1a2   :  { %v780_v15 = vpop.f32.mrf.mxu2 }
 0x1a3   :  { %v1397_v4 = vadd.f32 %v1396_v34, %v1225_v39  ;;  %1101 = vmatmul.f32.gmra.mxu3 %v2726_v30  ;;  %1463 = vmatmul.f32.gmra.mxu1 %v2725_v47  ;;  %v781_v36 = vadd.f32 %v780_v15, %v590_v57  ;;  %v2738_v34 = vld [vmem:[#allocation29_spill] sm:$0xff]  ;;  %v2743_v47 = vand.u32 4294901760, %v2741_v44  ;;  %v2744_v15 = vld [vmem:[#allocation36_spill] sm:$0xff] }
 0x1a5   :  { %1505 = vst [vmem:[#allocation2 + $0x70] sm:$0xff] %v1397_v4 }
 0x1a6   :  { %v1006_v41 = vpop.f32.mrf.mxu3  ;;  %v1232_v18 = vpop.f32.mrf.mxu0 }
 0x1a7   :  { %864 = vmatmul.f32.gmra.mxu2 %v2727_v31  ;;  %v1007_v58 = vadd.f32 %v1006_v41, %v781_v36  ;;  %v2745_v36 = vld [vmem:[#allocation34_spill] sm:$0xff] }
 0x1a8   :  { %v1404_v62 = vpop.f32.mrf.mxu1 }
 0x1a9   :  { %v1229_v51 = vadd.f32 %v1228_v61, %v1007_v58  ;;  %1295 = vmatmul.f32.gmra.mxu0 %v2728_v55  ;;  %v2746_v58 = vld [vmem:[#allocation33_spill] sm:$0xff] }
 0x1aa   :  { %v785_v53 = vpop.f32.mrf.mxu2 }
 0x1ab   :  { %v1401_v42 = vadd.f32 %v1400_v35, %v1229_v51  ;;  %1107 = vmatmul.f32.gmra.mxu3 %v2729_v1  ;;  %1467 = vmatmul.f32.gmra.mxu1 %v2728_v55  ;;  %v786_v59 = vadd.f32 %v785_v53, %v594_v21  ;;  %v2747_v55 = vand.u32 4294901760, %v2745_v36  ;;  %v2748_v53 = vld [vmem:[#allocation37_spill] sm:$0xff] }
 0x1ad   :  { %1506 = vst [vmem:[#allocation2 + $0x78] sm:$0xff] %v1401_v42 }
 0x1ae   :  { %v1012_v11 = vpop.f32.mrf.mxu3  ;;  %v1236_v38 = vpop.f32.mrf.mxu0 }
 0x1af   :  { %869 = vmatmul.f32.gmra.mxu2 %v2730_v60  ;;  %v1013_v16 = vadd.f32 %v1012_v11, %v786_v59 }
 0x1b0   :  { %v1408_v7 = vpop.f32.mrf.mxu1 }
 0x1b1   :  { %v1233_v2 = vadd.f32 %v1232_v18, %v1013_v16  ;;  %1299 = vmatmul.f32.gmra.mxu0 %v2731_v26 }
 0x1b2   :  { %v790_v63 = vpop.f32.mrf.mxu2 }
 0x1b3   :  { %v1405_v19 = vadd.f32 %v1404_v62, %v1233_v2  ;;  %1113 = vmatmul.f32.gmra.mxu3 %v2732_v6  ;;  %1471 = vmatmul.f32.gmra.mxu1 %v2731_v26  ;;  %v791_v22 = vadd.f32 %v790_v63, %v598_v0 }
 0x1b5   :  { %1507 = vst [vmem:[#allocation2 + $0x80] sm:$0xff] %v1405_v19 }
 0x1b6   :  { %v1018_v40 = vpop.f32.mrf.mxu3  ;;  %v1240_v5 = vpop.f32.mrf.mxu0 }
 0x1b7   :  { %874 = vmatmul.f32.gmra.mxu2 %v2733_v14  ;;  %v1019_v12 = vadd.f32 %v1018_v40, %v791_v22 }
 0x1b8   :  { %v1412_v54 = vpop.f32.mrf.mxu1 }
 0x1b9   :  { %v1237_v49 = vadd.f32 %v1236_v38, %v1019_v12  ;;  %1303 = vmatmul.f32.gmra.mxu0 %v2734_v56 }
 0x1ba   :  { %v795_v45 = vpop.f32.mrf.mxu2 }
 0x1bb   :  { %v1409_v33 = vadd.f32 %v1408_v7, %v1237_v49  ;;  %1119 = vmatmul.f32.gmra.mxu3 %v2736_v13  ;;  %1475 = vmatmul.f32.gmra.mxu1 %v2734_v56  ;;  %v796_v23 = vadd.f32 %v795_v45, %v602_v32  ;;  %v2749_v7 = vld [vmem:[#allocation38_spill] sm:$0xff] }
 0x1bd   :  { %1508 = vst [vmem:[#allocation2 + $0x88] sm:$0xff] %v1409_v33  ;;  %v2751_v33 = vld [vmem:[#allocation40_spill] sm:$0xff] }
 0x1be   :  { %v1024_v10 = vpop.f32.mrf.mxu3  ;;  %v1244_v48 = vpop.f32.mrf.mxu0 }
 0x1bf   :  { %879 = vmatmul.f32.gmra.mxu2 %v2737_v25  ;;  %v1025_v20 = vadd.f32 %v1024_v10, %v796_v23 }
 0x1c0   :  { %v1416_v27 = vpop.f32.mrf.mxu1 }
 0x1c1   :  { %v1241_v17 = vadd.f32 %v1240_v5, %v1025_v20  ;;  %1307 = vmatmul.f32.gmra.mxu0 %v2738_v34  ;;  %v2750_v5 = vld [vmem:[#allocation39_spill] sm:$0xff] }
 0x1c2   :  { %v800_v9 = vpop.f32.mrf.mxu2 }
 0x1c3   :  { %v1413_v28 = vadd.f32 %v1412_v54, %v1241_v17  ;;  %1125 = vmatmul.f32.gmra.mxu3 %v2739_v24  ;;  %1479 = vmatmul.f32.gmra.mxu1 %v2738_v34  ;;  %v801_v37 = vadd.f32 %v800_v9, %v2740_v3  ;;  %v2752_v34 = vld [vmem:[#allocation41_spill] sm:$0xff] }
 0x1c5   :  { %1509 = vst [vmem:[#allocation2 + $0x90] sm:$0xff] %v1413_v28 }
 0x1c6   :  { %v1030_v46 = vpop.f32.mrf.mxu3  ;;  %v1248_v8 = vpop.f32.mrf.mxu0 }
 0x1c7   :  { %884 = vmatmul.f32.gmra.mxu2 %v2741_v44  ;;  %v1031_v52 = vadd.f32 %v1030_v46, %v801_v37 }
 0x1c8   :  { %v1420_v61 = vpop.f32.mrf.mxu1 }
 0x1c9   :  { %v1245_v50 = vadd.f32 %v1244_v48, %v1031_v52  ;;  %1311 = vmatmul.f32.gmra.mxu0 %v2742_v29  ;;  %v2753_v52 = vld [vmem:[#allocation42_spill] sm:$0xff] }
 0x1ca   :  { %v805_v35 = vpop.f32.mrf.mxu2 }
 0x1cb   :  { %v1417_v39 = vadd.f32 %v1416_v27, %v1245_v50  ;;  %1131 = vmatmul.f32.gmra.mxu3 %v2743_v47  ;;  %1483 = vmatmul.f32.gmra.mxu1 %v2742_v29  ;;  %v806_v57 = vadd.f32 %v805_v35, %v2744_v15 }
 0x1cd   :  { %1510 = vst [vmem:[#allocation2 + $0x98] sm:$0xff] %v1417_v39 }
 0x1ce   :  { %v1036_v4 = vpop.f32.mrf.mxu3  ;;  %v1252_v30 = vpop.f32.mrf.mxu0 }
 0x1cf   :  { %889 = vmatmul.f32.gmra.mxu2 %v2745_v36  ;;  %v1037_v41 = vadd.f32 %v1036_v4, %v806_v57  ;;  %v2754_v4 = vld [vmem:[#allocation43_spill] sm:$0xff] }
 0x1d0   :  { %v1424_v18 = vpop.f32.mrf.mxu1 }
 0x1d1   :  { %v1249_v31 = vadd.f32 %v1248_v8, %v1037_v41  ;;  %1315 = vmatmul.f32.gmra.mxu0 %v2746_v58 }
 0x1d2   :  { %v810_v62 = vpop.f32.mrf.mxu2 }
 0x1d3   :  { %v1421_v51 = vadd.f32 %v1420_v61, %v1249_v31  ;;  %1137 = vmatmul.f32.gmra.mxu3 %v2747_v55  ;;  %1487 = vmatmul.f32.gmra.mxu1 %v2746_v58  ;;  %v811_v21 = vadd.f32 %v810_v62, %v2748_v53  ;;  %v2755_v55 = vld [vmem:[#allocation44_spill] sm:$0xff] }
 0x1d5   :  { %1511 = vst [vmem:[#allocation2 + $0xa0] sm:$0xff] %v1421_v51 }
 0x1d6   :  { %v1042_v42 = vpop.f32.mrf.mxu3  ;;  %v1256_v1 = vpop.f32.mrf.mxu0 }
 0x1d7   :  { %v1043_v59 = vadd.f32 %v1042_v42, %v811_v21 }
 0x1d8   :  { %v1428_v11 = vpop.f32.mrf.mxu1 }
 0x1d9   :  { %v1253_v38 = vadd.f32 %v1252_v30, %v1043_v59 }
 0x1da   :  { %v815_v60 = vpop.f32.mrf.mxu2 }
 0x1db   :  { %v1425_v16 = vadd.f32 %v1424_v18, %v1253_v38  ;;  %v816_v2 = vadd.f32 %v815_v60, %v2749_v7 }
 0x1dd   :  { %1512 = vst [vmem:[#allocation2 + $0xa8] sm:$0xff] %v1425_v16  ;;  %v2756_v16 = vld [vmem:[#allocation45_spill] sm:$0xff] }
 0x1de   :  { %v1048_v26 = vpop.f32.mrf.mxu3  ;;  %v1260_v63 = vpop.f32.mrf.mxu0 }
 0x1df   :  { %v1049_v0 = vadd.f32 %v1048_v26, %v816_v2 }
 0x1e0   :  { %v1432_v19 = vpop.f32.mrf.mxu1 }
 0x1e1   :  { %v1257_v6 = vadd.f32 %v1256_v1, %v1049_v0 }
 0x1e2   :  { %v820_v22 = vpop.f32.mrf.mxu2 }
 0x1e3   :  { %v1429_v40 = vadd.f32 %v1428_v11, %v1257_v6  ;;  %v821_v14 = vadd.f32 %v820_v22, %v2750_v5 }
 0x1e5   :  { %1513 = vst [vmem:[#allocation2 + $0xb0] sm:$0xff] %v1429_v40  ;;  %v2757_v40 = vld [vmem:[#allocation46_spill] sm:$0xff] }
 0x1e6   :  { %v1054_v12 = vpop.f32.mrf.mxu3  ;;  %v1264_v54 = vpop.f32.mrf.mxu0 }
 0x1e7   :  { %v1055_v49 = vadd.f32 %v1054_v12, %v821_v14 }
 0x1e8   :  { %v1436_v56 = vpop.f32.mrf.mxu1 }
 0x1e9   :  { %v1261_v45 = vadd.f32 %v1260_v63, %v1055_v49 }
 0x1ea   :  { %v825_v43 = vpop.f32.mrf.mxu2 }
 0x1eb   :  { %v1433_v32 = vadd.f32 %v1432_v19, %v1261_v45  ;;  %v826_v13 = vadd.f32 %v825_v43, %v2751_v33 }
 0x1ed   :  { %1514 = vst [vmem:[#allocation2 + $0xb8] sm:$0xff] %v1433_v32  ;;  %v2758_v32 = vld [vmem:[#allocation47_spill] sm:$0xff] }
 0x1ee   :  { %v1060_v23 = vpop.f32.mrf.mxu3  ;;  %v1268_v10 = vpop.f32.mrf.mxu0 }
 0x1ef   :  { %v1061_v48 = vadd.f32 %v1060_v23, %v826_v13 }
 0x1f0   :  { %v1440_v25 = vpop.f32.mrf.mxu1 }
 0x1f1   :  { %v1265_v20 = vadd.f32 %v1264_v54, %v1061_v48 }
 0x1f2   :  { %v830_v27 = vpop.f32.mrf.mxu2 }
 0x1f3   :  { %v1437_v17 = vadd.f32 %v1436_v56, %v1265_v20  ;;  %v831_v9 = vadd.f32 %v830_v27, %v2752_v34 }
 0x1f5   :  { %1515 = vst [vmem:[#allocation2 + $0xc0] sm:$0xff] %v1437_v17  ;;  %v2759_v17 = vld [vmem:[#allocation48_spill] sm:$0xff] }
 0x1f6   :  { %v1066_v28 = vpop.f32.mrf.mxu3  ;;  %v1272_v24 = vpop.f32.mrf.mxu0 }
 0x1f7   :  { %v1067_v3 = vadd.f32 %v1066_v28, %v831_v9 }
 0x1f8   :  { %v1444_v37 = vpop.f32.mrf.mxu1 }
 0x1f9   :  { %v1269_v46 = vadd.f32 %v1268_v10, %v1067_v3 }
 0x1fa   :  { %v835_v8 = vpop.f32.mrf.mxu2 }
 0x1fb   :  { %v1441_v44 = vadd.f32 %v1440_v25, %v1269_v46  ;;  %v836_v61 = vadd.f32 %v835_v8, %v2753_v52 }
 0x1fd   :  { %1516 = vst [vmem:[#allocation2 + $0xc8] sm:$0xff] %v1441_v44  ;;  %v2760_v44 = vld [vmem:[#allocation49_spill] sm:$0xff] }
 0x1fe   :  { %v1072_v50 = vpop.f32.mrf.mxu3  ;;  %v1276_v29 = vpop.f32.mrf.mxu0 }
 0x1ff   :  { %v1073_v35 = vadd.f32 %v1072_v50, %v836_v61 }
 0x200   :  { %v1448_v39 = vpop.f32.mrf.mxu1 }
 0x201   :  { %v1273_v47 = vadd.f32 %v1272_v24, %v1073_v35 }
 0x202   :  { %v840_v15 = vpop.f32.mrf.mxu2 }
 0x203   :  { %v1445_v57 = vadd.f32 %v1444_v37, %v1273_v47  ;;  %v841_v30 = vadd.f32 %v840_v15, %v2754_v4 }
 0x205   :  { %1517 = vst [vmem:[#allocation2 + $0xd0] sm:$0xff] %v1445_v57  ;;  %v2761_v57 = vld [vmem:[#allocation50_spill] sm:$0xff] }
 0x206   :  { %v1078_v36 = vpop.f32.mrf.mxu3  ;;  %v1280_v41 = vpop.f32.mrf.mxu0 }
 0x207   :  { %v1079_v18 = vadd.f32 %v1078_v36, %v841_v30 }
 0x208   :  { %v1452_v31 = vpop.f32.mrf.mxu1 }
 0x209   :  { %v1277_v58 = vadd.f32 %v1276_v29, %v1079_v18 }
 0x20a   :  { %v845_v62 = vpop.f32.mrf.mxu2 }
 0x20b   :  { %v1449_v51 = vadd.f32 %v1448_v39, %v1277_v58  ;;  %v846_v53 = vadd.f32 %v845_v62, %v2755_v55 }
 0x20d   :  { %1518 = vst [vmem:[#allocation2 + $0xd8] sm:$0xff] %v1449_v51  ;;  %v2762_v51 = vld [vmem:[#allocation51_spill] sm:$0xff] }
 0x20e   :  { %v1084_v21 = vpop.f32.mrf.mxu3  ;;  %v1284_v42 = vpop.f32.mrf.mxu0 }
 0x20f   :  { %v1085_v1 = vadd.f32 %v1084_v21, %v846_v53 }
 0x210   :  { %v1456_v59 = vpop.f32.mrf.mxu1 }
 0x211   :  { %v1281_v11 = vadd.f32 %v1280_v41, %v1085_v1 }
 0x212   :  { %v850_v38 = vpop.f32.mrf.mxu2 }
 0x213   :  { %v1453_v60 = vadd.f32 %v1452_v31, %v1281_v11  ;;  %v851_v7 = vadd.f32 %v850_v38, %v2756_v16  ;;  %v2763_v38 = vld [vmem:[#allocation52_spill] sm:$0xff] }
 0x215   :  { %1519 = vst [vmem:[#allocation2 + $0xe0] sm:$0xff] %v1453_v60 }
 0x216   :  { %v1090_v2 = vpop.f32.mrf.mxu3  ;;  %v1288_v26 = vpop.f32.mrf.mxu0 }
 0x217   :  { %v1091_v63 = vadd.f32 %v1090_v2, %v851_v7 }
 0x218   :  { %v1460_v0 = vpop.f32.mrf.mxu1 }
 0x219   :  { %v1285_v19 = vadd.f32 %v1284_v42, %v1091_v63 }
 0x21a   :  { %v855_v6 = vpop.f32.mrf.mxu2 }
 0x21b   :  { %v1457_v22 = vadd.f32 %v1456_v59, %v1285_v19  ;;  %v856_v5 = vadd.f32 %v855_v6, %v2757_v40  ;;  %v2764_v19 = vld [vmem:[#allocation54_spill] sm:$0xff] }
 0x21d   :  { %1520 = vst [vmem:[#allocation2 + $0xe8] sm:$0xff] %v1457_v22 }
 0x21e   :  { %v1096_v14 = vpop.f32.mrf.mxu3  ;;  %v1292_v12 = vpop.f32.mrf.mxu0 }
 0x21f   :  { %v1097_v54 = vadd.f32 %v1096_v14, %v856_v5 }
 0x220   :  { %v1464_v49 = vpop.f32.mrf.mxu1 }
 0x221   :  { %v1289_v56 = vadd.f32 %v1288_v26, %v1097_v54 }
 0x222   :  { %v860_v45 = vpop.f32.mrf.mxu2 }
 0x223   :  { %v1461_v43 = vadd.f32 %v1460_v0, %v1289_v56  ;;  %v861_v33 = vadd.f32 %v860_v45, %v2758_v32 }
 0x225   :  { %1521 = vst [vmem:[#allocation2 + $0xf0] sm:$0xff] %v1461_v43 }
 0x226   :  { %v1102_v13 = vpop.f32.mrf.mxu3  ;;  %v1296_v23 = vpop.f32.mrf.mxu0 }
 0x227   :  { %v1103_v10 = vadd.f32 %v1102_v13, %v861_v33 }
 0x228   :  { %v1468_v48 = vpop.f32.mrf.mxu1 }
 0x229   :  { %v1293_v25 = vadd.f32 %v1292_v12, %v1103_v10 }
 0x22a   :  { %v865_v20 = vpop.f32.mrf.mxu2 }
 0x22b   :  { %v1465_v27 = vadd.f32 %v1464_v49, %v1293_v25  ;;  %v866_v34 = vadd.f32 %v865_v20, %v2759_v17 }
 0x22d   :  { %1522 = vst [vmem:[#allocation2 + $0xf8] sm:$0xff] %v1465_v27 }
 0x22e   :  { %v1108_v9 = vpop.f32.mrf.mxu3  ;;  %v1300_v28 = vpop.f32.mrf.mxu0 }
 0x22f   :  { %v1109_v24 = vadd.f32 %v1108_v9, %v866_v34 }
 0x230   :  { %v1472_v3 = vpop.f32.mrf.mxu1 }
 0x231   :  { %v1297_v37 = vadd.f32 %v1296_v23, %v1109_v24 }
 0x232   :  { %v870_v46 = vpop.f32.mrf.mxu2 }
 0x233   :  { %v1469_v8 = vadd.f32 %v1468_v48, %v1297_v37  ;;  %v871_v52 = vadd.f32 %v870_v46, %v2760_v44 }
 0x235   :  { %1523 = vst [vmem:[#allocation2 + $0x100] sm:$0xff] %v1469_v8 }
 0x236   :  { %v1114_v61 = vpop.f32.mrf.mxu3  ;;  %v1304_v29 = vpop.f32.mrf.mxu0 }
 0x237   :  { %v1115_v50 = vadd.f32 %v1114_v61, %v871_v52 }
 0x238   :  { %v1476_v47 = vpop.f32.mrf.mxu1 }
 0x239   :  { %v1301_v35 = vadd.f32 %v1300_v28, %v1115_v50 }
 0x23a   :  { %v875_v39 = vpop.f32.mrf.mxu2 }
 0x23b   :  { %v1473_v15 = vadd.f32 %v1472_v3, %v1301_v35  ;;  %v876_v4 = vadd.f32 %v875_v39, %v2761_v57 }
 0x23d   :  { %1524 = vst [vmem:[#allocation2 + $0x108] sm:$0xff] %v1473_v15 }
 0x23e   :  { %v1120_v30 = vpop.f32.mrf.mxu3  ;;  %v1308_v31 = vpop.f32.mrf.mxu0 }
 0x23f   :  { %v1121_v36 = vadd.f32 %v1120_v30, %v876_v4 }
 0x240   :  { %v1480_v62 = vpop.f32.mrf.mxu1 }
 0x241   :  { %v1305_v41 = vadd.f32 %v1304_v29, %v1121_v36 }
 0x242   :  { %v880_v18 = vpop.f32.mrf.mxu2 }
 0x243   :  { %v1477_v58 = vadd.f32 %v1476_v47, %v1305_v41  ;;  %v881_v55 = vadd.f32 %v880_v18, %v2762_v51 }
 0x245   :  { %1525 = vst [vmem:[#allocation2 + $0x110] sm:$0xff] %v1477_v58 }
 0x246   :  { %v1126_v53 = vpop.f32.mrf.mxu3  ;;  %v1312_v11 = vpop.f32.mrf.mxu0 }
 0x247   :  { %v1127_v21 = vadd.f32 %v1126_v53, %v881_v55 }
 0x248   :  { %v1484_v7 = vpop.f32.mrf.mxu1 }
 0x249   :  { %v1309_v42 = vadd.f32 %v1308_v31, %v1127_v21 }
 0x24a   :  { %v885_v1 = vpop.f32.mrf.mxu2 }
 0x24b   :  { %v1481_v59 = vadd.f32 %v1480_v62, %v1309_v42  ;;  %v886_v60 = vadd.f32 %v885_v1, %v2763_v38 }
 0x24d   :  { %1526 = vst [vmem:[#allocation2 + $0x118] sm:$0xff] %v1481_v59 }
 0x24e   :  { %v1132_v16 = vpop.f32.mrf.mxu3  ;;  %v1316_v40 = vpop.f32.mrf.mxu0 }
 0x24f   :  { %v1133_v2 = vadd.f32 %v1132_v16, %v886_v60 }
 0x250   :  { %v1488_v14 = vpop.f32.mrf.mxu1 }
 0x251   :  { %v1313_v26 = vadd.f32 %v1312_v11, %v1133_v2 }
 0x252   :  { %v890_v63 = vpop.f32.mrf.mxu2 }
 0x253   :  { %v1485_v0 = vadd.f32 %v1484_v7, %v1313_v26  ;;  %v891_v6 = vadd.f32 %v890_v63, %v2764_v19 }
 0x255   :  { %1527 = vst [vmem:[#allocation2 + $0x120] sm:$0xff] %v1485_v0 }
 0x256   :  { %v1138_v22 = vpop.f32.mrf.mxu3 }
 0x257   :  { %v1139_v5 = vadd.f32 %v1138_v22, %v891_v6 }
 0x259   :  { %v1317_v12 = vadd.f32 %v1316_v40, %v1139_v5 }
 0x25b   :  { %v1489_v54 = vadd.f32 %v1488_v14, %v1317_v12 }
 0x25d   :  { %1528 = vst [vmem:[#allocation2 + $0x128] sm:$0xff] %v1489_v54 }
 0x25e   :  { %1541 = dma.vmem_to_hbm [thread:$0]  %s1534_s4, 4864, %s1536_s7, [#allocation3], %s1583_s8, %s1583_s8, %s1584_s9  }
 0x25f   :  { %1580 = dma.done.wait [#allocation3], 4864  }
 0x260   :  { %1581 = vsyncadd [#allocation3], 4294962432 }
 0x261   :  { %1546 = vsyncpa [#allocation3], 1 }

</bundles_post_ra>
